<compile_context>
chip_gen: v6e
topology: v6e:2x2x1
jax: 0.10.0
libtpu: 0.0.40
codegen_flags: <defaults>
</compile_context>

<pallas_src>
import jax
import jax.numpy as jnp
from jax.experimental import pallas as pl
from jax.experimental.pallas import tpu as pltpu

IN_DIM = 9216
HID = 128
OUT = 10
OUT_PAD = 128          # lane-dense class dimension
NEG_INF = -1e30        # forces padded logits to ~0 probability


def _round_up(n, m):
    return ((n + m - 1) // m) * m


def net2_kernel(x_ref, w1_ref, b1_ref, w2_ref, b2_ref, o_ref):
    """One batch-tile per grid point; full K (9216) contraction in one dot.

    x arrives as f32 and is cast to bf16 in-kernel (MXU-native) immediately
    before fc1; all accumulation is f32. Epilogue: bias + ReLU, fc2 over the
    padded 128-wide class dim, numerically-stable log_softmax. Padded class
    slots carry -1e30 bias so they contribute exp(...)=0 to the normalizer.
    """
    # fc1: (bb, 9216)bf16 @ (9216, 128)bf16 -> f32
    x_bf16 = x_ref[...].astype(jnp.bfloat16)
    h = jnp.dot(x_bf16, w1_ref[...], preferred_element_type=jnp.float32)
    h = jnp.maximum(h + b1_ref[...], 0.0)

    # fc2: (bb, 128) @ (128, 128) -> f32 ; padded columns are zero-weight,
    # padded bias slots are -1e30.
    logits = (
        jnp.dot(h, w2_ref[...], preferred_element_type=jnp.float32)
        + b2_ref[...]
    )

    # log_softmax along the (lane-dense) class dim. Max comes from the real
    # logits (padded slots are -1e30), padded exp() underflows to 0.
    m = jnp.max(logits, axis=1, keepdims=True)
    s = logits - m
    lse = jnp.log(jnp.sum(jnp.exp(s), axis=1, keepdims=True))
    o_ref[...] = (s - lse).astype(o_ref.dtype)


def prepare_weights(w1, b1, w2, b2):
    """One-time weight prep (call at model init, NOT per forward call).

    w1: [9216, 128], b1: [128], w2: [128, 10], b2: [10]
    (weights stored as [in_features, out_features], i.e. PyTorch W.T).
    """
    w1_bf16 = w1.astype(jnp.bfloat16)                      # resident MXU operand
    b1_2d = b1.reshape(1, HID).astype(jnp.float32)
    w2_pad = (
        jnp.zeros((HID, OUT_PAD), jnp.float32).at[:, :OUT].set(w2.astype(jnp.float32))
    )
    b2_pad = (
        jnp.full((1, OUT_PAD), NEG_INF, jnp.float32).at[0, :OUT].set(b2.astype(jnp.float32))
    )
    return w1_bf16, b1_2d, w2_pad, b2_pad


def net2_forward(x, w1_bf16, b1_2d, w2_pad, b2_pad):
    """x: [B, 9216] f32. Returns [B, 10] f32 log-probabilities."""
    B, K = x.shape
    assert K == IN_DIM

    # Batch tiling: <=256-row tiles on a "parallel" grid axis. Ragged batches
    # are zero-padded up to a tile multiple (padded rows are discarded below).
    if B <= 256:
        bb = _round_up(B, 8)
        b_pad = bb
    else:
        bb = 256
        b_pad = _round_up(B, bb)
    if b_pad != B:
        x = jnp.pad(x, ((0, b_pad - B), (0, 0)))

    grid = (b_pad // bb,)

    cost = pl.CostEstimate(
        flops=2 * b_pad * IN_DIM * HID + 2 * b_pad * HID * OUT_PAD,
        transcendentals=b_pad * OUT_PAD,               # exp + log in the epilogue
        bytes_accessed=(
            b_pad * IN_DIM * 4                         # x (f32)
            + IN_DIM * HID * 2                         # w1 (bf16, fetched once)
            + HID * 4 + HID * OUT_PAD * 4 + OUT_PAD * 4
            + b_pad * OUT_PAD * 4                      # output
        ),
    )

    out = pl.pallas_call(
        net2_kernel,
        out_shape=jax.ShapeDtypeStruct((b_pad, OUT_PAD), jnp.float32),
        grid_spec=pltpu.PrefetchScalarGridSpec(
            num_scalar_prefetch=0,
            grid=grid,
            in_specs=[
                pl.BlockSpec((bb, IN_DIM), lambda i: (i, 0)),     # x tile (f32)
                pl.BlockSpec((IN_DIM, HID), lambda i: (0, 0)),    # w1 bf16, resident
                pl.BlockSpec((1, HID), lambda i: (0, 0)),         # b1, resident
                pl.BlockSpec((HID, OUT_PAD), lambda i: (0, 0)),   # w2 padded, resident
                pl.BlockSpec((1, OUT_PAD), lambda i: (0, 0)),     # b2 padded, resident
            ],
            out_specs=pl.BlockSpec((bb, OUT_PAD), lambda i: (i, 0)),
        ),
        compiler_params=pltpu.CompilerParams(
            dimension_semantics=("parallel",),
            vmem_limit_bytes=48 << 20,   # fits bb=256 f32 x double-buffer + bf16 w1 on all gens
        ),
        cost_estimate=cost,
    )(x, w1_bf16, b1_2d, w2_pad, b2_pad)

    # Drop batch padding and the 118 fake class lanes.
    return out[:B, :OUT]


def reference_forward(x, w1, b1, w2, b2):
    h = jnp.maximum(x @ w1 + b1, 0.0)
    logits = h @ w2 + b2
    return jax.nn.log_softmax(logits, axis=1)


if __name__ == "__main__":
    key = jax.random.PRNGKey(0)
    kx, kw1, kb1, kw2, kb2 = jax.random.split(key, 5)

    B = 8  # small batch; feature dim 9216 is fixed by the module
    x = jax.random.normal(kx, (B, IN_DIM), dtype=jnp.float32)

    # Deterministic init mimicking nn.Linear's U(-1/sqrt(fan_in), 1/sqrt(fan_in)).
    lim1 = 1.0 / (IN_DIM ** 0.5)
    lim2 = 1.0 / (HID ** 0.5)
    w1 = jax.random.uniform(kw1, (IN_DIM, HID), jnp.float32, -lim1, lim1)
    b1 = jax.random.uniform(kb1, (HID,), jnp.float32, -lim1, lim1)
    w2 = jax.random.uniform(kw2, (HID, OUT), jnp.float32, -lim2, lim2)
    b2 = jax.random.uniform(kb2, (OUT,), jnp.float32, -lim2, lim2)

    # One-time weight prep (model-init path, outside the per-call hot loop).
    params = prepare_weights(w1, b1, w2, b2)

    out = net2_forward(x, *params)
    out = jax.block_until_ready(out)

    ref = reference_forward(x, w1, b1, w2, b2)
    assert out.shape == (B, OUT)
    # bf16 streaming of x/w1 over K=9216 -> loosened tolerance vs f32 reference.
    assert jnp.allclose(out, ref, atol=1e-2, rtol=1e-2), "mismatch vs reference"

    print("KERNEL_OK")
</pallas_src>

<mosaic_0001>
module attributes {stable_mosaic.version = 11 : i64} {
  func.func @net2_kernel(%arg0: i32, %arg1: memref<8x9216xf32, #tpu.memory_space<vmem>>, %arg2: memref<9216x128xbf16, #tpu.memory_space<vmem>>, %arg3: memref<1x128xf32, #tpu.memory_space<vmem>>, %arg4: memref<128x128xf32, #tpu.memory_space<vmem>>, %arg5: memref<1x128xf32, #tpu.memory_space<vmem>>, %arg6: memref<8x128xf32, #tpu.memory_space<vmem>>) attributes {dimension_semantics = [#tpu.dimension_semantics<parallel>], iteration_bounds = array<i64: 1>, scalar_prefetch = 0 : i64, scratch_operands = 0 : i64, tpu.core_type = #tpu.core_type<tc>, window_params = [{transform_indices = @transform_0, window_bounds = array<i64: 8, 9216>}, {pipeline_mode = #tpu.pipeline_mode<synchronous>, transform_indices = @transform_1, window_bounds = array<i64: 9216, 128>}, {pipeline_mode = #tpu.pipeline_mode<synchronous>, transform_indices = @transform_2, window_bounds = array<i64: 1, 128>}, {pipeline_mode = #tpu.pipeline_mode<synchronous>, transform_indices = @transform_3, window_bounds = array<i64: 128, 128>}, {pipeline_mode = #tpu.pipeline_mode<synchronous>, transform_indices = @transform_4, window_bounds = array<i64: 1, 128>}, {transform_indices = @transform_5, window_bounds = array<i64: 8, 128>}]} {
    %c0 = arith.constant 0 : index
    %c0_0 = arith.constant 0 : index
    %0 = vector.load %arg1[%c0, %c0_0] : memref<8x9216xf32, #tpu.memory_space<vmem>>, vector<8x9216xf32>
    %1 = arith.truncf %0 : vector<8x9216xf32> to vector<8x9216xbf16>
    %c0_1 = arith.constant 0 : index
    %c0_2 = arith.constant 0 : index
    %2 = vector.load %arg2[%c0_1, %c0_2] : memref<9216x128xbf16, #tpu.memory_space<vmem>>, vector<9216x128xbf16>
    %cst = arith.constant dense<0.000000e+00> : vector<8x128xf32>
    %3 = tpu.matmul %1, %2, %cst {dimension_numbers = #tpu.dot_dimension_numbers<[1], [0], [0], [1], [0, 0, 1, 1], [], []>} : vector<8x9216xbf16>, vector<9216x128xbf16>, vector<8x128xf32> -> vector<8x128xf32>
    %c0_3 = arith.constant 0 : index
    %c0_4 = arith.constant 0 : index
    %4 = vector.load %arg3[%c0_3, %c0_4] : memref<1x128xf32, #tpu.memory_space<vmem>>, vector<1x128xf32>
    %5 = vector.broadcast %4 : vector<1x128xf32> to vector<8x128xf32>
    %6 = arith.addf %3, %5 : vector<8x128xf32>
    %cst_5 = arith.constant 0.000000e+00 : f32
    %7 = vector.broadcast %cst_5 : f32 to vector<8x128xf32>
    %8 = arith.maximumf %6, %7 : vector<8x128xf32>
    %c0_6 = arith.constant 0 : index
    %c0_7 = arith.constant 0 : index
    %9 = vector.load %arg4[%c0_6, %c0_7] : memref<128x128xf32, #tpu.memory_space<vmem>>, vector<128x128xf32>
    %cst_8 = arith.constant dense<0.000000e+00> : vector<8x128xf32>
    %10 = tpu.matmul %8, %9, %cst_8 {dimension_numbers = #tpu.dot_dimension_numbers<[1], [0], [0], [1], [0, 0, 1, 1], [], []>} : vector<8x128xf32>, vector<128x128xf32>, vector<8x128xf32> -> vector<8x128xf32>
    %c0_9 = arith.constant 0 : index
    %c0_10 = arith.constant 0 : index
    %11 = vector.load %arg5[%c0_9, %c0_10] : memref<1x128xf32, #tpu.memory_space<vmem>>, vector<1x128xf32>
    %12 = vector.broadcast %11 : vector<1x128xf32> to vector<8x128xf32>
    %13 = arith.addf %10, %12 : vector<8x128xf32>
    %cst_11 = arith.constant dense<0xFF800000> : vector<8xf32>
    %14 = vector.multi_reduction <maximumf>, %13, %cst_11 [1] : vector<8x128xf32> to vector<8xf32>
    %15 = vector.shape_cast %14 : vector<8xf32> to vector<8x1xf32>
    %16 = vector.broadcast %15 : vector<8x1xf32> to vector<8x128xf32>
    %17 = arith.subf %13, %16 : vector<8x128xf32>
    %18 = math.exp %17 : vector<8x128xf32>
    %cst_12 = arith.constant dense<0.000000e+00> : vector<8xf32>
    %19 = vector.multi_reduction <add>, %18, %cst_12 [1] : vector<8x128xf32> to vector<8xf32>
    %20 = vector.shape_cast %19 : vector<8xf32> to vector<8x1xf32>
    %21 = math.log %20 : vector<8x1xf32>
    %22 = vector.broadcast %21 : vector<8x1xf32> to vector<8x128xf32>
    %23 = arith.subf %17, %22 : vector<8x128xf32>
    %c0_13 = arith.constant 0 : index
    %c0_14 = arith.constant 0 : index
    %24 = vector.load %arg6[%c0_13, %c0_14] : memref<8x128xf32, #tpu.memory_space<vmem>>, vector<8x128xf32>
    tpu.vector_store %arg6[%c0_13, %c0_14], %23 {strides = array<i32>} : memref<8x128xf32, #tpu.memory_space<vmem>>, vector<8x128xf32>,
    return
  }
  func.func @transform_0(%arg0: i32) -> (i32, i32) {
    %c0_i32 = arith.constant 0 : i32
    %c0_i32_0 = arith.constant 0 : i32
    return %arg0, %c0_i32 : i32, i32
  }
  func.func @transform_1(%arg0: i32) -> (i32, i32) {
    %c0_i32 = arith.constant 0 : i32
    %c0_i32_0 = arith.constant 0 : i32
    %c0_i32_1 = arith.constant 0 : i32
    return %c0_i32, %c0_i32_0 : i32, i32
  }
  func.func @transform_2(%arg0: i32) -> (i32, i32) {
    %c0_i32 = arith.constant 0 : i32
    %c0_i32_0 = arith.constant 0 : i32
    %c0_i32_1 = arith.constant 0 : i32
    return %c0_i32, %c0_i32_0 : i32, i32
  }
  func.func @transform_3(%arg0: i32) -> (i32, i32) {
    %c0_i32 = arith.constant 0 : i32
    %c0_i32_0 = arith.constant 0 : i32
    %c0_i32_1 = arith.constant 0 : i32
    return %c0_i32, %c0_i32_0 : i32, i32
  }
  func.func @transform_4(%arg0: i32) -> (i32, i32) {
    %c0_i32 = arith.constant 0 : i32
    %c0_i32_0 = arith.constant 0 : i32
    %c0_i32_1 = arith.constant 0 : i32
    return %c0_i32, %c0_i32_0 : i32, i32
  }
  func.func @transform_5(%arg0: i32) -> (i32, i32) {
    %c0_i32 = arith.constant 0 : i32
    %c0_i32_0 = arith.constant 0 : i32
    return %arg0, %c0_i32 : i32, i32
  }
}

</mosaic_0001>

<bundles_post_ra>
// kernel: tpu_custom_call.1
= control target key start
LH: loop header
LB: loop body
LE: loop exit
PB: predicated region body
PF: predicated region fallthrough
CT: control target
= control target key end

     0   :  { %10 = vsyncpa [#allocation3], 0  ;;  %s8640_s0 = inlined_call_operand.hbm [shape: f32[8,9216], index: 0, kind: input, shape index: {}]   ;;  %s8641_s1 = inlined_call_operand.hbm [shape: bf16[9216,128], index: 1, kind: input, shape index: {}]   ;;  %s8642_s2 = inlined_call_operand.hbm [shape: f32[1,128], index: 2, kind: input, shape index: {}]   ;;  %s8643_s3 = inlined_call_operand.hbm [shape: f32[128,128], index: 3, kind: input, shape index: {}]   ;;  %s8644_s4 = inlined_call_operand.hbm [shape: f32[1,128], index: 4, kind: input, shape index: {}]   ;;  %s8645_s5 = inlined_call_operand.hbm [shape: f32[8,128], index: 5, kind: output, shape index: {}]  }
   0x1   :  { %11 = vsyncpa [#allocation6], 0 }
   0x2   :  { %12 = vsyncpa [#allocation9], 0 }
   0x3   :  { %13 = vsyncpa [#allocation4], 0  ;;  %s8547_s18 = smov [#allocation5]  }
   0x4   :  { %s29_s19 = sshll.u32 %s8547_s18, 4  ;;  %s30_s19 = int_to_ptr.vmem [resolvable:$true] %s29_s19 }
   0x5   :  { %s8427_s20 = scalar_lea.vmem %s30_s19, 73728  ;;  %p8432_p1 = scmp.lt.s32.totalorder %s30_s19, %s30_s19 }
   0x6   :  { %p8428_p0 = scmp.ne.s32.totalorder %s30_s19, %s8427_s20  ;;  %p8433_p2 = scmp.lt.s32.totalorder %s8427_s20, %s8427_s20 }
   0x8   :  { %p8434_p3 = por %p8433_p2, %p8432_p1 }
   0xa   :  { %p8435_p4 = pnand %p8434_p3, %p8428_p0 }
   0xc   :  { %8438 = shalt.err (!%p8435_p4)
}
   0xd   :  { %s8548_s21 = smov 64   ;;  %s8549_s22 = smov 4  }
   0xe   :  { %35 = dma.hbm_to_vmem [thread:$0]  %s8641_s1, 73728, %s30_s19, [#allocation6], %s8548_s21, %s8548_s21, %s8549_s22  }
   0xf   :  { %s8550_s25 = smov [#allocation8]  }
  0x10   :  { %s51_s26 = sshll.u32 %s8550_s25, 4  ;;  %s52_s26 = int_to_ptr.vmem [resolvable:$true] %s51_s26 }
  0x11   :  { %s8447_s27 = scalar_lea.vmem %s52_s26, 2048  ;;  %p8452_p6 = scmp.lt.s32.totalorder %s52_s26, %s52_s26 }
  0x12   :  { %p8448_p5 = scmp.ne.s32.totalorder %s52_s26, %s8447_s27  ;;  %p8453_p7 = scmp.lt.s32.totalorder %s8447_s27, %s8447_s27 }
  0x14   :  { %p8454_p8 = por %p8453_p7, %p8452_p6 }
  0x16   :  { %p8455_p9 = pnand %p8454_p8, %p8448_p5 }
  0x18   :  { %8458 = shalt.err (!%p8455_p9)
}
  0x19   :  { %s8551_s28 = smov 128   ;;  %s8552_s29 = smov 8  }
  0x1a   :  { %57 = dma.hbm_to_vmem [thread:$0]  %s8643_s3, 2048, %s52_s26, [#allocation9], %s8551_s28, %s8551_s28, %s8552_s29  }
  0x1b   :  { %s8553_s7 = smov [#allocation2]   ;;  %s8554_s9 = smov [#allocation7]  }
  0x1c   :  { %s20_s8 = sshll.u32 %s8553_s7, 4  ;;  %s42_s1 = sshll.u32 %s8554_s9, 4  ;;  %s21_s8 = int_to_ptr.vmem [resolvable:$true] %s20_s8  ;;  %s43_s1 = int_to_ptr.vmem [resolvable:$true] %s42_s1 }
  0x1d   :  { %s8467_s10 = scalar_lea.vmem %s21_s8, 9216  ;;  %p8472_p11 = scmp.lt.s32.totalorder %s21_s8, %s21_s8 }
  0x1e   :  { %p8468_p10 = scmp.ne.s32.totalorder %s21_s8, %s8467_s10  ;;  %p8473_p12 = scmp.lt.s32.totalorder %s8467_s10, %s8467_s10 }
  0x20   :  { %p8474_p13 = por %p8473_p12, %p8472_p11 }
  0x22   :  { %p8475_p0 = pnand %p8474_p13, %p8468_p10 }
  0x24   :  { %8478 = shalt.err (!%p8475_p0)
}
  0x25   :  { %23 = dma.hbm_to_vmem [thread:$0]  %s8640_s0, 9216, %s21_s8, [#allocation3]  }
  0x26   :  { %s8487_s13 = scalar_lea.vmem %s43_s1, 16  ;;  %s8491_s3 = scalar_lea.vmem %s43_s1, 32 }
  0x27   :  { %p8488_p1 = scmp.ne.s32.totalorder %s43_s1, %s8487_s13  ;;  %p8492_p2 = scmp.lt.s32.totalorder %s43_s1, %s43_s1 }
  0x28   :  { %p8493_p3 = scmp.lt.s32.totalorder %s8491_s3, %s8487_s13 }
  0x2a   :  { %p8494_p4 = por %p8493_p3, %p8492_p2 }
  0x2c   :  { %p8495_p5 = pnand %p8494_p4, %p8488_p1 }
  0x2e   :  { %8498 = shalt.err (!%p8495_p5)
}
  0x2f   :  { %45 = dma.hbm_to_vmem [thread:$0]  %s8642_s2, 16, %s43_s1, [#allocation6]  }
  0x30   :  { %s8555_s16 = smov [#allocation10]  }
  0x31   :  { %s64_s17 = sshll.u32 %s8555_s16, 4  ;;  %s65_s17 = int_to_ptr.vmem [resolvable:$true] %s64_s17 }
  0x32   :  { %s8507_s18 = scalar_lea.vmem %s65_s17, 16  ;;  %s8511_s19 = scalar_lea.vmem %s65_s17, 32 }
  0x33   :  { %p8508_p6 = scmp.ne.s32.totalorder %s65_s17, %s8507_s18  ;;  %p8512_p7 = scmp.lt.s32.totalorder %s65_s17, %s65_s17 }
  0x34   :  { %p8513_p8 = scmp.lt.s32.totalorder %s8511_s19, %s8507_s18 }
  0x36   :  { %p8514_p9 = por %p8513_p8, %p8512_p7 }
  0x38   :  { %p8515_p10 = pnand %p8514_p9, %p8508_p6 }
  0x3a   :  { %8518 = shalt.err (!%p8515_p10)
}
  0x3b   :  { %67 = dma.hbm_to_vmem [thread:$0]  %s8644_s4, 16, %s65_s17, [#allocation9]  }
  0x3c   :  { %8539 = dma.done.wait [#allocation3], 9216  }
  0x3d   :  { %8540 = vsyncadd [#allocation3], 4294958080 }
  0x3e   :  { %8541 = dma.done.wait [#allocation6], 73744  }
  0x3f   :  { %8542 = vsyncadd [#allocation6], 4294893552 }
  0x40   :  { %8543 = dma.done.wait [#allocation9], 2064  }
  0x41   :  { %8544 = vsyncadd [#allocation9], 4294965232  ;;  %v7839_v0 = vld [vmem:[#allocation5 + $0x78] sm:$0xff]   ;;  %v7843_v4 = vld [vmem:[#allocation5 + $0x70] sm:$0xff]   ;;  %vm8557_vm0 = vmmov 0   ;;  %s8558_s2 = smov [#allocation11]  }
  0x42   :  { %v7840_v1 = vld [vmem:[#allocation5 + $0xf8] sm:$0xff]   ;;  %6983 = vmatprep.subr.bf16.mxu0 %v7839_v0  ;;  %v7844_v5 = vld [vmem:[#allocation5 + $0xf0] sm:$0xff]   ;;  %v7847_v8 = vld [vmem:[#allocation5 + $0x68] sm:$0xff]   ;;  %s6394_s4 = sshll.u32 %s8558_s2, 4  ;;  %s6395_s4 = int_to_ptr.vmem [resolvable:$true] %s6394_s4 }
  0x43   :  { %v7841_v2 = vld [vmem:[#allocation5 + $0x38] sm:$0xff]   ;;  %7005 = vmatprep.subr.bf16.mxu1 %v7840_v1  ;;  %v7845_v6 = vld [vmem:[#allocation5 + $0x30] sm:$0xff]   ;;  %v7848_v9 = vld [vmem:[#allocation5 + $0xe8] sm:$0xff]   ;;  %s8519_s21 = scalar_lea.vmem %s6395_s4, 128  ;;  %p8524_p12 = scmp.lt.s32.totalorder %s6395_s4, %s6395_s4 }
  0x44   :  { %v7842_v3 = vld [vmem:[#allocation5 + $0xb8] sm:$0xff]   ;;  %6984 = vmatpush3.bf16.msra.mxu0 %v7841_v2  ;;  %v7846_v7 = vld [vmem:[#allocation5 + $0xb0] sm:$0xff]   ;;  %v7849_v10 = vld [vmem:[#allocation5 + $0x28] sm:$0xff]   ;;  %p8520_p11 = scmp.ne.s32.totalorder %s6395_s4, %s8519_s21  ;;  %p8525_p13 = scmp.lt.s32.totalorder %s8519_s21, %s8519_s21 }
  0x45   :  { %7006 = vmatpush3.bf16.msra.mxu1 %v7842_v3  ;;  %6985 = vmatprep.subr.bf16.mxu0 %v7843_v4  ;;  %v7850_v11 = vld [vmem:[#allocation5 + $0xa8] sm:$0xff]   ;;  %v7851_v12 = vld [vmem:[#allocation5 + $0x60] sm:$0xff]   ;;  %v7855_v16 = vld [vmem:[#allocation5 + $0x58] sm:$0xff]  }
  0x46   :  { %7007 = vmatprep.subr.bf16.mxu1 %v7844_v5  ;;  %v7852_v13 = vld [vmem:[#allocation5 + $0xe0] sm:$0xff]   ;;  %v7856_v17 = vld [vmem:[#allocation5 + $0xd8] sm:$0xff]   ;;  %v7859_v20 = vld [vmem:[#allocation5 + $0x50] sm:$0xff]   ;;  %p8526_p0 = por %p8525_p13, %p8524_p12 }
  0x47   :  { %v7853_v14 = vld [vmem:[#allocation5 + $0x20] sm:$0xff]   ;;  %v7857_v18 = vld [vmem:[#allocation5 + $0x18] sm:$0xff]   ;;  %v7860_v21 = vld [vmem:[#allocation5 + $0xd0] sm:$0xff]  }
  0x48   :  { %6986 = vmatpush3.bf16.msra.mxu0 %v7845_v6  ;;  %v7854_v15 = vld [vmem:[#allocation5 + $0xa0] sm:$0xff]   ;;  %v7858_v19 = vld [vmem:[#allocation5 + $0x98] sm:$0xff]   ;;  %v7861_v22 = vld [vmem:[#allocation5 + $0x10] sm:$0xff]   ;;  %p8527_p1 = pnand %p8526_p0, %p8520_p11 }
  0x49   :  { %7008 = vmatpush3.bf16.msra.mxu1 %v7846_v7  ;;  %6987 = vmatprep.subr.bf16.mxu0 %v7847_v8  ;;  %v7862_v23 = vld [vmem:[#allocation5 + $0x90] sm:$0xff]   ;;  %v7863_v24 = vld [vmem:[#allocation5 + $0x48] sm:$0xff]   ;;  %v7867_v28 = vld [vmem:[#allocation5 + $0x40] sm:$0xff]  }
  0x4a   :  { %7009 = vmatprep.subr.bf16.mxu1 %v7848_v9  ;;  %v7864_v25 = vld [vmem:[#allocation5 + $0xc8] sm:$0xff]   ;;  %v7868_v29 = vld [vmem:[#allocation5 + $0xc0] sm:$0xff]   ;;  %v87_v33 = vld [vmem:[#allocation2 + $0x18] sm:$0xff] }
  0x4b   :  { %v7865_v26 = vld [vmem:[#allocation5 + $0x8] sm:$0xff]   ;;  %v7869_v30 = vld [vmem:[#allocation5] sm:$0xff]   ;;  %v159_v36 = vpack.c.bf16 %v87_v33, %v87_v33  ;;  %v86_v38 = vld [vmem:[#allocation2 + $0x10] sm:$0xff] }
  0x4c   :  { %6988 = vmatpush3.bf16.msra.mxu0 %v7849_v10  ;;  %v7866_v27 = vld [vmem:[#allocation5 + $0x88] sm:$0xff]   ;;  %v7870_v31 = vld [vmem:[#allocation5 + $0x80] sm:$0xff]   ;;  %v158_v39 = vpack.c.bf16 %v86_v38, %v86_v38  ;;  %v7871_v40 = vld [vmem:[#allocation5 + $0x178] sm:$0xff]  }
  0x4d   :  { %7010 = vmatpush3.bf16.msra.mxu1 %v7850_v11  ;;  %6989 = vmatprep.subr.bf16.mxu0 %v7851_v12  ;;  %v85_v32 = vld [vmem:[#allocation2 + $0x8] sm:$0xff]  ;;  %v84_v34 = vld [vmem:[#allocation2] sm:$0xff]  ;;  %v7872_v41 = vld [vmem:[#allocation5 + $0x1f8] sm:$0xff]  }
  0x4e   :  { %7011 = vmatprep.subr.bf16.mxu1 %v7852_v13  ;;  %v157_v35 = vpack.c.bf16 %v85_v32, %v85_v32  ;;  %v156_v37 = vpack.c.bf16 %v84_v34, %v84_v34  ;;  %4915 = vmatprep.mubr.bf16.mxu1 %v159_v36  ;;  %v7873_v42 = vld [vmem:[#allocation5 + $0x138] sm:$0xff]   ;;  %v7875_v44 = vld [vmem:[#allocation5 + $0x170] sm:$0xff]   ;;  %v7879_v48 = vld [vmem:[#allocation5 + $0x168] sm:$0xff]  }
  0x4f   :  { %v7874_v43 = vld [vmem:[#allocation5 + $0x1b8] sm:$0xff]   ;;  %v7876_v45 = vld [vmem:[#allocation5 + $0x1f0] sm:$0xff]   ;;  %v7880_v49 = vld [vmem:[#allocation5 + $0x1e8] sm:$0xff]  }
  0x50   :  { %6990 = vmatpush3.bf16.msra.mxu0 %v7853_v14  ;;  %4875 = vmatprep.mubr.bf16.mxu0 %v157_v35  ;;  %v7877_v46 = vld [vmem:[#allocation5 + $0x130] sm:$0xff]   ;;  %v7881_v50 = vld [vmem:[#allocation5 + $0x128] sm:$0xff]   ;;  %v7883_v52 = vld [vmem:[#allocation5 + $0x160] sm:$0xff]  }
  0x51   :  { %7012 = vmatpush3.bf16.msra.mxu1 %v7854_v15  ;;  %6991 = vmatprep.subr.bf16.mxu0 %v7855_v16  ;;  %v7878_v47 = vld [vmem:[#allocation5 + $0x1b0] sm:$0xff]   ;;  %v7882_v51 = vld [vmem:[#allocation5 + $0x1a8] sm:$0xff]   ;;  %v7884_v53 = vld [vmem:[#allocation5 + $0x1e0] sm:$0xff]  }
  0x52   :  { %7013 = vmatprep.subr.bf16.mxu1 %v7856_v17  ;;  %v7885_v54 = vld [vmem:[#allocation5 + $0x120] sm:$0xff]   ;;  %v7887_v56 = vld [vmem:[#allocation5 + $0x158] sm:$0xff]   ;;  %v7891_v60 = vld [vmem:[#allocation5 + $0x150] sm:$0xff]  }
  0x53   :  { %v7886_v55 = vld [vmem:[#allocation5 + $0x1a0] sm:$0xff]   ;;  %v7888_v57 = vld [vmem:[#allocation5 + $0x1d8] sm:$0xff]   ;;  %v7892_v61 = vld [vmem:[#allocation5 + $0x1d0] sm:$0xff]  }
  0x54   :  { %6992 = vmatpush3.bf16.msra.mxu0 %v7857_v18  ;;  %v7889_v58 = vld [vmem:[#allocation5 + $0x118] sm:$0xff]   ;;  %v7893_v62 = vld [vmem:[#allocation5 + $0x110] sm:$0xff]   ;;  %v7895_v0 = vld [vmem:[#allocation5 + $0x148] sm:$0xff]  }
  0x55   :  { %7014 = vmatpush3.bf16.msra.mxu1 %v7858_v19  ;;  %6993 = vmatprep.subr.bf16.mxu0 %v7859_v20  ;;  %v7890_v59 = vld [vmem:[#allocation5 + $0x198] sm:$0xff]   ;;  %v7894_v63 = vld [vmem:[#allocation5 + $0x190] sm:$0xff]   ;;  %v7896_v1 = vld [vmem:[#allocation5 + $0x1c8] sm:$0xff]  }
  0x56   :  { %7015 = vmatprep.subr.bf16.mxu1 %v7860_v21  ;;  %v7897_v2 = vld [vmem:[#allocation5 + $0x108] sm:$0xff]   ;;  %v7899_v4 = vld [vmem:[#allocation5 + $0x140] sm:$0xff]   ;;  %v91_v9 = vld [vmem:[#allocation2 + $0x38] sm:$0xff] }
  0x57   :  { %v7898_v3 = vld [vmem:[#allocation5 + $0x188] sm:$0xff]   ;;  %v7900_v5 = vld [vmem:[#allocation5 + $0x1c0] sm:$0xff]   ;;  %v163_v11 = vpack.c.bf16 %v91_v9, %v91_v9  ;;  %v90_v13 = vld [vmem:[#allocation2 + $0x30] sm:$0xff] }
  0x58   :  { %6994 = vmatpush3.bf16.msra.mxu0 %v7861_v22  ;;  %v7901_v6 = vld [vmem:[#allocation5 + $0x100] sm:$0xff]   ;;  %v89_v8 = vld [vmem:[#allocation2 + $0x28] sm:$0xff]  ;;  %v162_v15 = vpack.c.bf16 %v90_v13, %v90_v13  ;;  %v7903_v16 = vld [vmem:[#allocation5 + $0x278] sm:$0xff]  }
  0x59   :  { %7016 = vmatpush3.bf16.msra.mxu1 %v7862_v23  ;;  %6995 = vmatprep.subr.bf16.mxu0 %v7863_v24  ;;  %v7902_v7 = vld [vmem:[#allocation5 + $0x180] sm:$0xff]   ;;  %v161_v10 = vpack.c.bf16 %v89_v8, %v89_v8  ;;  %v7904_v17 = vld [vmem:[#allocation5 + $0x2f8] sm:$0xff]   ;;  %v7907_v20 = vld [vmem:[#allocation5 + $0x270] sm:$0xff]  }
  0x5a   :  { %7017 = vmatprep.subr.bf16.mxu1 %v7864_v25  ;;  %v88_v12 = vld [vmem:[#allocation2 + $0x20] sm:$0xff]  ;;  %v7905_v18 = vld [vmem:[#allocation5 + $0x238] sm:$0xff]   ;;  %v7908_v21 = vld [vmem:[#allocation5 + $0x2f0] sm:$0xff]  }
  0x5b   :  { %v160_v14 = vpack.c.bf16 %v88_v12, %v88_v12  ;;  %v7906_v19 = vld [vmem:[#allocation5 + $0x2b8] sm:$0xff]   ;;  %v7909_v22 = vld [vmem:[#allocation5 + $0x230] sm:$0xff]   ;;  %v7911_v24 = vld [vmem:[#allocation5 + $0x268] sm:$0xff]  }
  0x5c   :  { %6996 = vmatpush3.bf16.msra.mxu0 %v7865_v26  ;;  %v7910_v23 = vld [vmem:[#allocation5 + $0x2b0] sm:$0xff]   ;;  %v7912_v25 = vld [vmem:[#allocation5 + $0x2e8] sm:$0xff]   ;;  %v7919_v32 = vld [vmem:[#allocation5 + $0x258] sm:$0xff]  }
  0x5d   :  { %7018 = vmatpush3.bf16.msra.mxu1 %v7866_v27  ;;  %6997 = vmatprep.subr.bf16.mxu0 %v7867_v28  ;;  %v7913_v26 = vld [vmem:[#allocation5 + $0x228] sm:$0xff]   ;;  %v7915_v28 = vld [vmem:[#allocation5 + $0x260] sm:$0xff]   ;;  %v7920_v33 = vld [vmem:[#allocation5 + $0x2d8] sm:$0xff]  }
  0x5e   :  { %7019 = vmatprep.subr.bf16.mxu1 %v7868_v29  ;;  %v7914_v27 = vld [vmem:[#allocation5 + $0x2a8] sm:$0xff]   ;;  %v7916_v29 = vld [vmem:[#allocation5 + $0x2e0] sm:$0xff]   ;;  %v7921_v34 = vld [vmem:[#allocation5 + $0x218] sm:$0xff]  }
  0x5f   :  { %v7922_v35 = vld [vmem:[#allocation5 + $0x298] sm:$0xff]   ;;  %v7923_v36 = vld [vmem:[#allocation5 + $0x250] sm:$0xff]  }
  0x60   :  { %6998 = vmatpush3.bf16.msra.mxu0 %v7869_v30  ;;  %v7917_v30 = vld [vmem:[#allocation5 + $0x220] sm:$0xff]   ;;  %v7925_v38 = vld [vmem:[#allocation5 + $0x210] sm:$0xff]   ;;  %v7951_v8 = vld [vmem:[#allocation5 + $0x358] sm:$0xff]  }
  0x61   :  { %7020 = vmatpush3.bf16.msra.mxu1 %v7870_v31  ;;  %7027 = vmatprep.subr.bf16.mxu0 %v7871_v40  ;;  %v7918_v31 = vld [vmem:[#allocation5 + $0x2a0] sm:$0xff]   ;;  %v7927_v40 = vld [vmem:[#allocation5 + $0x248] sm:$0xff]   ;;  %v7952_v9 = vld [vmem:[#allocation5 + $0x3d8] sm:$0xff]  }
  0x62   :  { %7049 = vmatprep.subr.bf16.mxu1 %v7872_v41  ;;  %v7928_v41 = vld [vmem:[#allocation5 + $0x2c8] sm:$0xff]   ;;  %v7955_v12 = vld [vmem:[#allocation5 + $0x350] sm:$0xff]  }
  0x63   :  { %4876 = vmatmul.mubr.bf16.vlgmr.msra.gmra.mxu0 %v156_v37  ;;  %v7924_v37 = vld [vmem:[#allocation5 + $0x2d0] sm:$0xff]  }
  0x64   :  { %4916 = vmatmul.mubr.bf16.vlgmr.msra.gmra.mxu1 %v158_v39  ;;  %7028 = vmatpush3.bf16.msra.mxu0 %v7873_v42  ;;  %v7926_v39 = vld [vmem:[#allocation5 + $0x290] sm:$0xff]   ;;  %v7929_v42 = vld [vmem:[#allocation5 + $0x208] sm:$0xff]  }
  0x65   :  { %7050 = vmatpush3.bf16.msra.mxu1 %v7874_v43  ;;  %7029 = vmatprep.subr.bf16.mxu0 %v7875_v44  ;;  %v7930_v43 = vld [vmem:[#allocation5 + $0x288] sm:$0xff]   ;;  %v7931_v44 = vld [vmem:[#allocation5 + $0x240] sm:$0xff]   ;;  %v7956_v13 = vld [vmem:[#allocation5 + $0x3d0] sm:$0xff]  }
  0x66   :  { %7051 = vmatprep.subr.bf16.mxu1 %v7876_v45  ;;  %4955 = vmatprep.mubr.bf16.mxu0 %v161_v10  ;;  %v7932_v45 = vld [vmem:[#allocation5 + $0x2c0] sm:$0xff]   ;;  %v7953_v10 = vld [vmem:[#allocation5 + $0x318] sm:$0xff]  }
  0x67   :  { %4995 = vmatprep.mubr.bf16.mxu1 %v163_v11  ;;  %v7954_v11 = vld [vmem:[#allocation5 + $0x398] sm:$0xff]  }
  0x68   :  { %7030 = vmatpush3.bf16.msra.mxu0 %v7877_v46  ;;  %v7933_v46 = vld [vmem:[#allocation5 + $0x200] sm:$0xff]  }
  0x69   :  { %7052 = vmatpush3.bf16.msra.mxu1 %v7878_v47  ;;  %7031 = vmatprep.subr.bf16.mxu0 %v7879_v48  ;;  %v7934_v47 = vld [vmem:[#allocation5 + $0x280] sm:$0xff]   ;;  %v93_v48 = vld [vmem:[#allocation2 + $0x48] sm:$0xff] }
  0x6a   :  { %7053 = vmatprep.subr.bf16.mxu1 %v7880_v49  ;;  %v165_v49 = vpack.c.bf16 %v93_v48, %v93_v48  ;;  %v7983_v48 = vld [vmem:[#allocation5 + $0x458] sm:$0xff]  }
  0x6c   :  { %7032 = vmatpush3.bf16.msra.mxu0 %v7881_v50  ;;  %v95_v50 = vld [vmem:[#allocation2 + $0x58] sm:$0xff] }
  0x6d   :  { %7054 = vmatpush3.bf16.msra.mxu1 %v7882_v51  ;;  %7033 = vmatprep.subr.bf16.mxu0 %v7883_v52  ;;  %v92_v51 = vld [vmem:[#allocation2 + $0x40] sm:$0xff]  ;;  %v94_v52 = vld [vmem:[#allocation2 + $0x50] sm:$0xff] }
  0x6e   :  { %7055 = vmatprep.subr.bf16.mxu1 %v7884_v53  ;;  %v167_v53 = vpack.c.bf16 %v95_v50, %v95_v50  ;;  %v7985_v50 = vld [vmem:[#allocation5 + $0x418] sm:$0xff]  }
  0x70   :  { %7034 = vmatpush3.bf16.msra.mxu0 %v7885_v54  ;;  %v164_v54 = vpack.c.bf16 %v92_v51, %v92_v51  ;;  %v7986_v51 = vld [vmem:[#allocation5 + $0x498] sm:$0xff]  }
  0x71   :  { %7056 = vmatpush3.bf16.msra.mxu1 %v7886_v55  ;;  %7035 = vmatprep.subr.bf16.mxu0 %v7887_v56  ;;  %v166_v55 = vpack.c.bf16 %v94_v52, %v94_v52  ;;  %v7935_v56 = vld [vmem:[#allocation5 + $0x378] sm:$0xff]   ;;  %v7987_v52 = vld [vmem:[#allocation5 + $0x450] sm:$0xff]  }
  0x72   :  { %7057 = vmatprep.subr.bf16.mxu1 %v7888_v57  ;;  %v7936_v57 = vld [vmem:[#allocation5 + $0x3f8] sm:$0xff]  }
  0x74   :  { %7036 = vmatpush3.bf16.msra.mxu0 %v7889_v58  ;;  %v7937_v58 = vld [vmem:[#allocation5 + $0x338] sm:$0xff]  }
  0x75   :  { %7058 = vmatpush3.bf16.msra.mxu1 %v7890_v59  ;;  %7037 = vmatprep.subr.bf16.mxu0 %v7891_v60  ;;  %v7938_v59 = vld [vmem:[#allocation5 + $0x3b8] sm:$0xff]   ;;  %v7939_v60 = vld [vmem:[#allocation5 + $0x370] sm:$0xff]  }
  0x76   :  { %7059 = vmatprep.subr.bf16.mxu1 %v7892_v61  ;;  %v7940_v61 = vld [vmem:[#allocation5 + $0x3f0] sm:$0xff]  }
  0x78   :  { %7038 = vmatpush3.bf16.msra.mxu0 %v7893_v62  ;;  %v7941_v62 = vld [vmem:[#allocation5 + $0x330] sm:$0xff]  }
  0x79   :  { %7060 = vmatpush3.bf16.msra.mxu1 %v7894_v63  ;;  %7039 = vmatprep.subr.bf16.mxu0 %v7895_v0  ;;  %v7942_v63 = vld [vmem:[#allocation5 + $0x3b0] sm:$0xff]   ;;  %v7943_v0 = vld [vmem:[#allocation5 + $0x368] sm:$0xff]  }
  0x7a   :  { %7061 = vmatprep.subr.bf16.mxu1 %v7896_v1  ;;  %v7944_v1 = vld [vmem:[#allocation5 + $0x3e8] sm:$0xff]  }
  0x7c   :  { %7040 = vmatpush3.bf16.msra.mxu0 %v7897_v2  ;;  %v7945_v2 = vld [vmem:[#allocation5 + $0x328] sm:$0xff]  }
  0x7d   :  { %7062 = vmatpush3.bf16.msra.mxu1 %v7898_v3  ;;  %7041 = vmatprep.subr.bf16.mxu0 %v7899_v4  ;;  %v7946_v3 = vld [vmem:[#allocation5 + $0x3a8] sm:$0xff]   ;;  %v7947_v4 = vld [vmem:[#allocation5 + $0x360] sm:$0xff]  }
  0x7e   :  { %7063 = vmatprep.subr.bf16.mxu1 %v7900_v5  ;;  %v7948_v5 = vld [vmem:[#allocation5 + $0x3e0] sm:$0xff]  }
  0x80   :  { %7042 = vmatpush3.bf16.msra.mxu0 %v7901_v6  ;;  %v7949_v6 = vld [vmem:[#allocation5 + $0x320] sm:$0xff]  }
  0x81   :  { %7064 = vmatpush3.bf16.msra.mxu1 %v7902_v7  ;;  %7071 = vmatprep.subr.bf16.mxu0 %v7903_v16  ;;  %v7950_v7 = vld [vmem:[#allocation5 + $0x3a0] sm:$0xff]   ;;  %v7959_v16 = vld [vmem:[#allocation5 + $0x348] sm:$0xff]  }
  0x82   :  { %7093 = vmatprep.subr.bf16.mxu1 %v7904_v17  ;;  %v7960_v17 = vld [vmem:[#allocation5 + $0x3c8] sm:$0xff]  }
  0x83   :  { %4956 = vmatmul.mubr.bf16.vlgmr.msra.gmra.mxu0 %v160_v14  ;;  %v7957_v14 = vld [vmem:[#allocation5 + $0x310] sm:$0xff]  }
  0x84   :  { %4996 = vmatmul.mubr.bf16.vlgmr.msra.gmra.mxu1 %v162_v15  ;;  %7072 = vmatpush3.bf16.msra.mxu0 %v7905_v18  ;;  %v7958_v15 = vld [vmem:[#allocation5 + $0x390] sm:$0xff]   ;;  %v7961_v18 = vld [vmem:[#allocation5 + $0x308] sm:$0xff]  }
  0x85   :  { %7094 = vmatpush3.bf16.msra.mxu1 %v7906_v19  ;;  %7073 = vmatprep.subr.bf16.mxu0 %v7907_v20  ;;  %v7962_v19 = vld [vmem:[#allocation5 + $0x388] sm:$0xff]   ;;  %v7963_v20 = vld [vmem:[#allocation5 + $0x340] sm:$0xff]  }
  0x86   :  { %7095 = vmatprep.subr.bf16.mxu1 %v7908_v21  ;;  %5035 = vmatprep.mubr.bf16.mxu0 %v165_v49  ;;  %v7964_v21 = vld [vmem:[#allocation5 + $0x3c0] sm:$0xff]   ;;  %v7984_v49 = vld [vmem:[#allocation5 + $0x4d8] sm:$0xff]  }
  0x87   :  { %5075 = vmatprep.mubr.bf16.mxu1 %v167_v53  ;;  %v7988_v53 = vld [vmem:[#allocation5 + $0x4d0] sm:$0xff]  }
  0x88   :  { %7074 = vmatpush3.bf16.msra.mxu0 %v7909_v22  ;;  %v7965_v22 = vld [vmem:[#allocation5 + $0x300] sm:$0xff]  }
  0x89   :  { %7096 = vmatpush3.bf16.msra.mxu1 %v7910_v23  ;;  %7075 = vmatprep.subr.bf16.mxu0 %v7911_v24  ;;  %v7966_v23 = vld [vmem:[#allocation5 + $0x380] sm:$0xff]   ;;  %v97_v24 = vld [vmem:[#allocation2 + $0x68] sm:$0xff] }
  0x8a   :  { %7097 = vmatprep.subr.bf16.mxu1 %v7912_v25  ;;  %v99_v25 = vld [vmem:[#allocation2 + $0x78] sm:$0xff] }
  0x8c   :  { %7076 = vmatpush3.bf16.msra.mxu0 %v7913_v26  ;;  %v96_v26 = vld [vmem:[#allocation2 + $0x60] sm:$0xff] }
  0x8d   :  { %7098 = vmatpush3.bf16.msra.mxu1 %v7914_v27  ;;  %7077 = vmatprep.subr.bf16.mxu0 %v7915_v28  ;;  %v169_v27 = vpack.c.bf16 %v97_v24, %v97_v24  ;;  %v171_v28 = vpack.c.bf16 %v99_v25, %v99_v25  ;;  %v8015_v24 = vld [vmem:[#allocation5 + $0x558] sm:$0xff]  }
  0x8e   :  { %7099 = vmatprep.subr.bf16.mxu1 %v7916_v29  ;;  %v168_v29 = vpack.c.bf16 %v96_v26, %v96_v26  ;;  %v8016_v25 = vld [vmem:[#allocation5 + $0x5d8] sm:$0xff]  }
  0x8f   :  { %v8017_v26 = vld [vmem:[#allocation5 + $0x518] sm:$0xff]  }
  0x90   :  { %7078 = vmatpush3.bf16.msra.mxu0 %v7917_v30  ;;  %v98_v30 = vld [vmem:[#allocation2 + $0x70] sm:$0xff] }
  0x91   :  { %7100 = vmatpush3.bf16.msra.mxu1 %v7918_v31  ;;  %7079 = vmatprep.subr.bf16.mxu0 %v7919_v32  ;;  %v170_v31 = vpack.c.bf16 %v98_v30, %v98_v30  ;;  %v7967_v32 = vld [vmem:[#allocation5 + $0x478] sm:$0xff]   ;;  %v8021_v30 = vld [vmem:[#allocation5 + $0x510] sm:$0xff]  }
  0x92   :  { %7101 = vmatprep.subr.bf16.mxu1 %v7920_v33  ;;  %v7968_v33 = vld [vmem:[#allocation5 + $0x4f8] sm:$0xff]  }
  0x94   :  { %7080 = vmatpush3.bf16.msra.mxu0 %v7921_v34  ;;  %v7969_v34 = vld [vmem:[#allocation5 + $0x438] sm:$0xff]  }
  0x95   :  { %7102 = vmatpush3.bf16.msra.mxu1 %v7922_v35  ;;  %7081 = vmatprep.subr.bf16.mxu0 %v7923_v36  ;;  %v7970_v35 = vld [vmem:[#allocation5 + $0x4b8] sm:$0xff]   ;;  %v7971_v36 = vld [vmem:[#allocation5 + $0x470] sm:$0xff]  }
  0x96   :  { %7103 = vmatprep.subr.bf16.mxu1 %v7924_v37  ;;  %v7972_v37 = vld [vmem:[#allocation5 + $0x4f0] sm:$0xff]  }
  0x98   :  { %7082 = vmatpush3.bf16.msra.mxu0 %v7925_v38  ;;  %v7973_v38 = vld [vmem:[#allocation5 + $0x430] sm:$0xff]  }
  0x99   :  { %7104 = vmatpush3.bf16.msra.mxu1 %v7926_v39  ;;  %7083 = vmatprep.subr.bf16.mxu0 %v7927_v40  ;;  %v7974_v39 = vld [vmem:[#allocation5 + $0x4b0] sm:$0xff]   ;;  %v7975_v40 = vld [vmem:[#allocation5 + $0x468] sm:$0xff]  }
  0x9a   :  { %7105 = vmatprep.subr.bf16.mxu1 %v7928_v41  ;;  %v7976_v41 = vld [vmem:[#allocation5 + $0x4e8] sm:$0xff]  }
  0x9c   :  { %7084 = vmatpush3.bf16.msra.mxu0 %v7929_v42  ;;  %v7977_v42 = vld [vmem:[#allocation5 + $0x428] sm:$0xff]  }
  0x9d   :  { %7106 = vmatpush3.bf16.msra.mxu1 %v7930_v43  ;;  %7085 = vmatprep.subr.bf16.mxu0 %v7931_v44  ;;  %v7978_v43 = vld [vmem:[#allocation5 + $0x4a8] sm:$0xff]   ;;  %v7979_v44 = vld [vmem:[#allocation5 + $0x460] sm:$0xff]  }
  0x9e   :  { %7107 = vmatprep.subr.bf16.mxu1 %v7932_v45  ;;  %v7980_v45 = vld [vmem:[#allocation5 + $0x4e0] sm:$0xff]  }
  0xa0   :  { %7086 = vmatpush3.bf16.msra.mxu0 %v7933_v46  ;;  %v7981_v46 = vld [vmem:[#allocation5 + $0x420] sm:$0xff]  }
  0xa1   :  { %7108 = vmatpush3.bf16.msra.mxu1 %v7934_v47  ;;  %7115 = vmatprep.subr.bf16.mxu0 %v7935_v56  ;;  %v7982_v47 = vld [vmem:[#allocation5 + $0x4a0] sm:$0xff]   ;;  %v7991_v56 = vld [vmem:[#allocation5 + $0x448] sm:$0xff]  }
  0xa2   :  { %7137 = vmatprep.subr.bf16.mxu1 %v7936_v57  ;;  %v7992_v57 = vld [vmem:[#allocation5 + $0x4c8] sm:$0xff]  }
  0xa3   :  { %5036 = vmatmul.mubr.bf16.vlgmr.msra.gmra.mxu0 %v164_v54  ;;  %v7989_v54 = vld [vmem:[#allocation5 + $0x410] sm:$0xff]  }
  0xa4   :  { %5076 = vmatmul.mubr.bf16.vlgmr.msra.gmra.mxu1 %v166_v55  ;;  %7116 = vmatpush3.bf16.msra.mxu0 %v7937_v58  ;;  %v7990_v55 = vld [vmem:[#allocation5 + $0x490] sm:$0xff]   ;;  %v7993_v58 = vld [vmem:[#allocation5 + $0x408] sm:$0xff]  }
  0xa5   :  { %7138 = vmatpush3.bf16.msra.mxu1 %v7938_v59  ;;  %7117 = vmatprep.subr.bf16.mxu0 %v7939_v60  ;;  %v7994_v59 = vld [vmem:[#allocation5 + $0x488] sm:$0xff]   ;;  %v7995_v60 = vld [vmem:[#allocation5 + $0x440] sm:$0xff]  }
  0xa6   :  { %7139 = vmatprep.subr.bf16.mxu1 %v7940_v61  ;;  %5115 = vmatprep.mubr.bf16.mxu0 %v169_v27  ;;  %v7996_v61 = vld [vmem:[#allocation5 + $0x4c0] sm:$0xff]   ;;  %v8018_v27 = vld [vmem:[#allocation5 + $0x598] sm:$0xff]  }
  0xa7   :  { %5155 = vmatprep.mubr.bf16.mxu1 %v171_v28  ;;  %v8019_v28 = vld [vmem:[#allocation5 + $0x550] sm:$0xff]  }
  0xa8   :  { %7118 = vmatpush3.bf16.msra.mxu0 %v7941_v62  ;;  %v7997_v62 = vld [vmem:[#allocation5 + $0x400] sm:$0xff]  }
  0xa9   :  { %7140 = vmatpush3.bf16.msra.mxu1 %v7942_v63  ;;  %7119 = vmatprep.subr.bf16.mxu0 %v7943_v0  ;;  %v7998_v63 = vld [vmem:[#allocation5 + $0x480] sm:$0xff]   ;;  %v101_v0 = vld [vmem:[#allocation2 + $0x88] sm:$0xff] }
  0xaa   :  { %7141 = vmatprep.subr.bf16.mxu1 %v7944_v1  ;;  %v103_v1 = vld [vmem:[#allocation2 + $0x98] sm:$0xff] }
  0xac   :  { %7120 = vmatpush3.bf16.msra.mxu0 %v7945_v2  ;;  %v173_v2 = vpack.c.bf16 %v101_v0, %v101_v0  ;;  %v8047_v0 = vld [vmem:[#allocation5 + $0x658] sm:$0xff]  }
  0xad   :  { %7142 = vmatpush3.bf16.msra.mxu1 %v7946_v3  ;;  %7121 = vmatprep.subr.bf16.mxu0 %v7947_v4  ;;  %v175_v3 = vpack.c.bf16 %v103_v1, %v103_v1  ;;  %v100_v4 = vld [vmem:[#allocation2 + $0x80] sm:$0xff]  ;;  %v8048_v1 = vld [vmem:[#allocation5 + $0x6d8] sm:$0xff]  }
  0xae   :  { %7143 = vmatprep.subr.bf16.mxu1 %v7948_v5  ;;  %v102_v5 = vld [vmem:[#allocation2 + $0x90] sm:$0xff] }
  0xb0   :  { %7122 = vmatpush3.bf16.msra.mxu0 %v7949_v6  ;;  %v172_v6 = vpack.c.bf16 %v100_v4, %v100_v4  ;;  %v8051_v4 = vld [vmem:[#allocation5 + $0x650] sm:$0xff]  }
  0xb1   :  { %7144 = vmatpush3.bf16.msra.mxu1 %v7950_v7  ;;  %7123 = vmatprep.subr.bf16.mxu0 %v7951_v8  ;;  %v174_v7 = vpack.c.bf16 %v102_v5, %v102_v5  ;;  %v7999_v8 = vld [vmem:[#allocation5 + $0x578] sm:$0xff]   ;;  %v8052_v5 = vld [vmem:[#allocation5 + $0x6d0] sm:$0xff]  }
  0xb2   :  { %7145 = vmatprep.subr.bf16.mxu1 %v7952_v9  ;;  %v8000_v9 = vld [vmem:[#allocation5 + $0x5f8] sm:$0xff]  }
  0xb4   :  { %7124 = vmatpush3.bf16.msra.mxu0 %v7953_v10  ;;  %v8001_v10 = vld [vmem:[#allocation5 + $0x538] sm:$0xff]  }
  0xb5   :  { %7146 = vmatpush3.bf16.msra.mxu1 %v7954_v11  ;;  %7125 = vmatprep.subr.bf16.mxu0 %v7955_v12  ;;  %v8002_v11 = vld [vmem:[#allocation5 + $0x5b8] sm:$0xff]   ;;  %v8003_v12 = vld [vmem:[#allocation5 + $0x570] sm:$0xff]  }
  0xb6   :  { %7147 = vmatprep.subr.bf16.mxu1 %v7956_v13  ;;  %v8004_v13 = vld [vmem:[#allocation5 + $0x5f0] sm:$0xff]  }
  0xb8   :  { %7126 = vmatpush3.bf16.msra.mxu0 %v7957_v14  ;;  %v8005_v14 = vld [vmem:[#allocation5 + $0x530] sm:$0xff]  }
  0xb9   :  { %7148 = vmatpush3.bf16.msra.mxu1 %v7958_v15  ;;  %7127 = vmatprep.subr.bf16.mxu0 %v7959_v16  ;;  %v8006_v15 = vld [vmem:[#allocation5 + $0x5b0] sm:$0xff]   ;;  %v8007_v16 = vld [vmem:[#allocation5 + $0x568] sm:$0xff]  }
  0xba   :  { %7149 = vmatprep.subr.bf16.mxu1 %v7960_v17  ;;  %v8008_v17 = vld [vmem:[#allocation5 + $0x5e8] sm:$0xff]  }
  0xbc   :  { %7128 = vmatpush3.bf16.msra.mxu0 %v7961_v18  ;;  %v8009_v18 = vld [vmem:[#allocation5 + $0x528] sm:$0xff]  }
  0xbd   :  { %7150 = vmatpush3.bf16.msra.mxu1 %v7962_v19  ;;  %7129 = vmatprep.subr.bf16.mxu0 %v7963_v20  ;;  %v8010_v19 = vld [vmem:[#allocation5 + $0x5a8] sm:$0xff]   ;;  %v8011_v20 = vld [vmem:[#allocation5 + $0x560] sm:$0xff]  }
  0xbe   :  { %7151 = vmatprep.subr.bf16.mxu1 %v7964_v21  ;;  %v8012_v21 = vld [vmem:[#allocation5 + $0x5e0] sm:$0xff]  }
  0xc0   :  { %7130 = vmatpush3.bf16.msra.mxu0 %v7965_v22  ;;  %v8013_v22 = vld [vmem:[#allocation5 + $0x520] sm:$0xff]  }
  0xc1   :  { %7152 = vmatpush3.bf16.msra.mxu1 %v7966_v23  ;;  %7159 = vmatprep.subr.bf16.mxu0 %v7967_v32  ;;  %v8014_v23 = vld [vmem:[#allocation5 + $0x5a0] sm:$0xff]   ;;  %v8023_v32 = vld [vmem:[#allocation5 + $0x548] sm:$0xff]  }
  0xc2   :  { %7181 = vmatprep.subr.bf16.mxu1 %v7968_v33  ;;  %v8024_v33 = vld [vmem:[#allocation5 + $0x5c8] sm:$0xff]  }
  0xc3   :  { %5116 = vmatmul.mubr.bf16.vlgmr.msra.gmra.mxu0 %v168_v29  ;;  %v8020_v29 = vld [vmem:[#allocation5 + $0x5d0] sm:$0xff]  }
  0xc4   :  { %5156 = vmatmul.mubr.bf16.vlgmr.msra.gmra.mxu1 %v170_v31  ;;  %7160 = vmatpush3.bf16.msra.mxu0 %v7969_v34  ;;  %v8022_v31 = vld [vmem:[#allocation5 + $0x590] sm:$0xff]   ;;  %v8025_v34 = vld [vmem:[#allocation5 + $0x508] sm:$0xff]  }
  0xc5   :  { %7182 = vmatpush3.bf16.msra.mxu1 %v7970_v35  ;;  %7161 = vmatprep.subr.bf16.mxu0 %v7971_v36  ;;  %v8026_v35 = vld [vmem:[#allocation5 + $0x588] sm:$0xff]   ;;  %v8027_v36 = vld [vmem:[#allocation5 + $0x540] sm:$0xff]  }
  0xc6   :  { %7183 = vmatprep.subr.bf16.mxu1 %v7972_v37  ;;  %5195 = vmatprep.mubr.bf16.mxu0 %v173_v2  ;;  %v8028_v37 = vld [vmem:[#allocation5 + $0x5c0] sm:$0xff]   ;;  %v8049_v2 = vld [vmem:[#allocation5 + $0x618] sm:$0xff]  }
  0xc7   :  { %5235 = vmatprep.mubr.bf16.mxu1 %v175_v3  ;;  %v8050_v3 = vld [vmem:[#allocation5 + $0x698] sm:$0xff]  }
  0xc8   :  { %7162 = vmatpush3.bf16.msra.mxu0 %v7973_v38  ;;  %v8029_v38 = vld [vmem:[#allocation5 + $0x500] sm:$0xff]  }
  0xc9   :  { %7184 = vmatpush3.bf16.msra.mxu1 %v7974_v39  ;;  %7163 = vmatprep.subr.bf16.mxu0 %v7975_v40  ;;  %v8030_v39 = vld [vmem:[#allocation5 + $0x580] sm:$0xff]   ;;  %v105_v40 = vld [vmem:[#allocation2 + $0xa8] sm:$0xff] }
  0xca   :  { %7185 = vmatprep.subr.bf16.mxu1 %v7976_v41  ;;  %v177_v41 = vpack.c.bf16 %v105_v40, %v105_v40  ;;  %v8067_v40 = vld [vmem:[#allocation5 + $0x770] sm:$0xff]  }
  0xcc   :  { %7164 = vmatpush3.bf16.msra.mxu0 %v7977_v42  ;;  %v107_v42 = vld [vmem:[#allocation2 + $0xb8] sm:$0xff] }
  0xcd   :  { %7186 = vmatpush3.bf16.msra.mxu1 %v7978_v43  ;;  %7165 = vmatprep.subr.bf16.mxu0 %v7979_v44  ;;  %v104_v43 = vld [vmem:[#allocation2 + $0xa0] sm:$0xff]  ;;  %v106_v44 = vld [vmem:[#allocation2 + $0xb0] sm:$0xff] }
  0xce   :  { %7187 = vmatprep.subr.bf16.mxu1 %v7980_v45  ;;  %v179_v45 = vpack.c.bf16 %v107_v42, %v107_v42 }
  0xd0   :  { %7166 = vmatpush3.bf16.msra.mxu0 %v7981_v46  ;;  %v176_v46 = vpack.c.bf16 %v104_v43, %v104_v43  ;;  %v8069_v43 = vld [vmem:[#allocation5 + $0x730] sm:$0xff]  }
  0xd1   :  { %7188 = vmatpush3.bf16.msra.mxu1 %v7982_v47  ;;  %7167 = vmatprep.subr.bf16.mxu0 %v7983_v48  ;;  %v178_v47 = vpack.c.bf16 %v106_v44, %v106_v44  ;;  %v8031_v48 = vld [vmem:[#allocation5 + $0x678] sm:$0xff]   ;;  %v8070_v44 = vld [vmem:[#allocation5 + $0x7b0] sm:$0xff]  }
  0xd2   :  { %7189 = vmatprep.subr.bf16.mxu1 %v7984_v49  ;;  %v8032_v49 = vld [vmem:[#allocation5 + $0x6f8] sm:$0xff]  }
  0xd4   :  { %7168 = vmatpush3.bf16.msra.mxu0 %v7985_v50  ;;  %v8033_v50 = vld [vmem:[#allocation5 + $0x638] sm:$0xff]  }
  0xd5   :  { %7190 = vmatpush3.bf16.msra.mxu1 %v7986_v51  ;;  %7169 = vmatprep.subr.bf16.mxu0 %v7987_v52  ;;  %v8034_v51 = vld [vmem:[#allocation5 + $0x6b8] sm:$0xff]   ;;  %v8035_v52 = vld [vmem:[#allocation5 + $0x670] sm:$0xff]  }
  0xd6   :  { %7191 = vmatprep.subr.bf16.mxu1 %v7988_v53  ;;  %v8036_v53 = vld [vmem:[#allocation5 + $0x6f0] sm:$0xff]  }
  0xd8   :  { %7170 = vmatpush3.bf16.msra.mxu0 %v7989_v54  ;;  %v8037_v54 = vld [vmem:[#allocation5 + $0x630] sm:$0xff]  }
  0xd9   :  { %7192 = vmatpush3.bf16.msra.mxu1 %v7990_v55  ;;  %7171 = vmatprep.subr.bf16.mxu0 %v7991_v56  ;;  %v8038_v55 = vld [vmem:[#allocation5 + $0x6b0] sm:$0xff]   ;;  %v8039_v56 = vld [vmem:[#allocation5 + $0x668] sm:$0xff]  }
  0xda   :  { %7193 = vmatprep.subr.bf16.mxu1 %v7992_v57  ;;  %v8040_v57 = vld [vmem:[#allocation5 + $0x6e8] sm:$0xff]  }
  0xdc   :  { %7172 = vmatpush3.bf16.msra.mxu0 %v7993_v58  ;;  %v8041_v58 = vld [vmem:[#allocation5 + $0x628] sm:$0xff]  }
  0xdd   :  { %7194 = vmatpush3.bf16.msra.mxu1 %v7994_v59  ;;  %7173 = vmatprep.subr.bf16.mxu0 %v7995_v60  ;;  %v8042_v59 = vld [vmem:[#allocation5 + $0x6a8] sm:$0xff]   ;;  %v8043_v60 = vld [vmem:[#allocation5 + $0x660] sm:$0xff]  }
  0xde   :  { %7195 = vmatprep.subr.bf16.mxu1 %v7996_v61  ;;  %v8044_v61 = vld [vmem:[#allocation5 + $0x6e0] sm:$0xff]  }
  0xe0   :  { %7174 = vmatpush3.bf16.msra.mxu0 %v7997_v62  ;;  %v8045_v62 = vld [vmem:[#allocation5 + $0x620] sm:$0xff]  }
  0xe1   :  { %7196 = vmatpush3.bf16.msra.mxu1 %v7998_v63  ;;  %7203 = vmatprep.subr.bf16.mxu0 %v7999_v8  ;;  %v8046_v63 = vld [vmem:[#allocation5 + $0x6a0] sm:$0xff]   ;;  %v8055_v8 = vld [vmem:[#allocation5 + $0x648] sm:$0xff]  }
  0xe2   :  { %7225 = vmatprep.subr.bf16.mxu1 %v8000_v9  ;;  %v8056_v9 = vld [vmem:[#allocation5 + $0x6c8] sm:$0xff]  }
  0xe3   :  { %5196 = vmatmul.mubr.bf16.vlgmr.msra.gmra.mxu0 %v172_v6  ;;  %v8053_v6 = vld [vmem:[#allocation5 + $0x610] sm:$0xff]  }
  0xe4   :  { %5236 = vmatmul.mubr.bf16.vlgmr.msra.gmra.mxu1 %v174_v7  ;;  %7204 = vmatpush3.bf16.msra.mxu0 %v8001_v10  ;;  %v8054_v7 = vld [vmem:[#allocation5 + $0x690] sm:$0xff]   ;;  %v8057_v10 = vld [vmem:[#allocation5 + $0x608] sm:$0xff]  }
  0xe5   :  { %7226 = vmatpush3.bf16.msra.mxu1 %v8002_v11  ;;  %7205 = vmatprep.subr.bf16.mxu0 %v8003_v12  ;;  %v8058_v11 = vld [vmem:[#allocation5 + $0x688] sm:$0xff]   ;;  %v8059_v12 = vld [vmem:[#allocation5 + $0x640] sm:$0xff]  }
  0xe6   :  { %7227 = vmatprep.subr.bf16.mxu1 %v8004_v13  ;;  %5275 = vmatprep.mubr.bf16.mxu0 %v177_v41  ;;  %v8068_v41 = vld [vmem:[#allocation5 + $0x7f0] sm:$0xff]  }
  0xe7   :  { %5315 = vmatprep.mubr.bf16.mxu1 %v179_v45  ;;  %v8071_v45 = vld [vmem:[#allocation5 + $0x768] sm:$0xff]  }
  0xe8   :  { %7206 = vmatpush3.bf16.msra.mxu0 %v8005_v14 }
  0xe9   :  { %7228 = vmatpush3.bf16.msra.mxu1 %v8006_v15  ;;  %7207 = vmatprep.subr.bf16.mxu0 %v8007_v16  ;;  %v8060_v15 = vld [vmem:[#allocation5 + $0x6c0] sm:$0xff]  }
  0xea   :  { %7229 = vmatprep.subr.bf16.mxu1 %v8008_v17  ;;  %v8061_v16 = vld [vmem:[#allocation5 + $0x600] sm:$0xff]  }
  0xec   :  { %7208 = vmatpush3.bf16.msra.mxu0 %v8009_v18 }
  0xed   :  { %7230 = vmatpush3.bf16.msra.mxu1 %v8010_v19  ;;  %7209 = vmatprep.subr.bf16.mxu0 %v8011_v20  ;;  %v8062_v19 = vld [vmem:[#allocation5 + $0x680] sm:$0xff]  }
  0xee   :  { %7231 = vmatprep.subr.bf16.mxu1 %v8012_v21 }
  0xf0   :  { %7210 = vmatpush3.bf16.msra.mxu0 %v8013_v22  ;;  %v109_v22 = vld [vmem:[#allocation2 + $0xc8] sm:$0xff] }
  0xf1   :  { %7232 = vmatpush3.bf16.msra.mxu1 %v8014_v23  ;;  %7211 = vmatprep.subr.bf16.mxu0 %v8015_v24  ;;  %v111_v23 = vld [vmem:[#allocation2 + $0xd8] sm:$0xff]  ;;  %v108_v24 = vld [vmem:[#allocation2 + $0xc0] sm:$0xff] }
  0xf2   :  { %7233 = vmatprep.subr.bf16.mxu1 %v8016_v25 }
  0xf4   :  { %7212 = vmatpush3.bf16.msra.mxu0 %v8017_v26 }
  0xf5   :  { %7234 = vmatpush3.bf16.msra.mxu1 %v8018_v27  ;;  %7213 = vmatprep.subr.bf16.mxu0 %v8019_v28  ;;  %v181_v27 = vpack.c.bf16 %v109_v22, %v109_v22  ;;  %v183_v28 = vpack.c.bf16 %v111_v23, %v111_v23  ;;  %v8095_v22 = vld [vmem:[#allocation5 + $0x878] sm:$0xff]  }
  0xf6   :  { %7235 = vmatprep.subr.bf16.mxu1 %v8020_v29  ;;  %v180_v29 = vpack.c.bf16 %v108_v24, %v108_v24  ;;  %v8096_v24 = vld [vmem:[#allocation5 + $0x8f8] sm:$0xff]  }
  0xf8   :  { %7214 = vmatpush3.bf16.msra.mxu0 %v8021_v30  ;;  %v110_v30 = vld [vmem:[#allocation2 + $0xd0] sm:$0xff] }
  0xf9   :  { %7236 = vmatpush3.bf16.msra.mxu1 %v8022_v31  ;;  %7215 = vmatprep.subr.bf16.mxu0 %v8023_v32  ;;  %v182_v31 = vpack.c.bf16 %v110_v30, %v110_v30  ;;  %v8063_v32 = vld [vmem:[#allocation5 + $0x778] sm:$0xff]   ;;  %v8100_v30 = vld [vmem:[#allocation5 + $0x8f0] sm:$0xff]  }
  0xfa   :  { %7237 = vmatprep.subr.bf16.mxu1 %v8024_v33 }
  0xfc   :  { %7216 = vmatpush3.bf16.msra.mxu0 %v8025_v34 }
  0xfd   :  { %7238 = vmatpush3.bf16.msra.mxu1 %v8026_v35  ;;  %7217 = vmatprep.subr.bf16.mxu0 %v8027_v36  ;;  %v8064_v35 = vld [vmem:[#allocation5 + $0x7f8] sm:$0xff]  }
  0xfe   :  { %7239 = vmatprep.subr.bf16.mxu1 %v8028_v37  ;;  %v8065_v36 = vld [vmem:[#allocation5 + $0x738] sm:$0xff]  }
  0xff   :  { %v8066_v37 = vld [vmem:[#allocation5 + $0x7b8] sm:$0xff]  }
 0x100   :  { %7218 = vmatpush3.bf16.msra.mxu0 %v8029_v38  ;;  %v6405_v38 = vld [vmem:[#allocation7] ss:$0 sm:$0xff] }
 0x101   :  { %7240 = vmatpush3.bf16.msra.mxu1 %v8030_v39  ;;  %7247 = vmatprep.subr.bf16.mxu0 %v8031_v48  ;;  %v8074_v48 = vld [vmem:[#allocation5 + $0x7a8] sm:$0xff]  }
 0x102   :  { %7269 = vmatprep.subr.bf16.mxu1 %v8032_v49  ;;  %v8075_v49 = vld [vmem:[#allocation5 + $0x760] sm:$0xff]  }
 0x103   :  { %5276 = vmatmul.mubr.bf16.vlgmr.msra.gmra.mxu0 %v176_v46  ;;  %v8072_v46 = vld [vmem:[#allocation5 + $0x7e8] sm:$0xff]  }
 0x104   :  { %5316 = vmatmul.mubr.bf16.vlgmr.msra.gmra.mxu1 %v178_v47  ;;  %7248 = vmatpush3.bf16.msra.mxu0 %v8033_v50  ;;  %v8073_v47 = vld [vmem:[#allocation5 + $0x728] sm:$0xff]   ;;  %v8076_v50 = vld [vmem:[#allocation5 + $0x7e0] sm:$0xff]  }
 0x105   :  { %7270 = vmatpush3.bf16.msra.mxu1 %v8034_v51  ;;  %7249 = vmatprep.subr.bf16.mxu0 %v8035_v52  ;;  %v8077_v51 = vld [vmem:[#allocation5 + $0x720] sm:$0xff]  }
 0x106   :  { %7271 = vmatprep.subr.bf16.mxu1 %v8036_v53  ;;  %5355 = vmatprep.mubr.bf16.mxu0 %v181_v27  ;;  %v8078_v52 = vld [vmem:[#allocation5 + $0x7a0] sm:$0xff]   ;;  %v8079_v53 = vld [vmem:[#allocation5 + $0x758] sm:$0xff]  }
 0x107   :  { %5395 = vmatprep.mubr.bf16.mxu1 %v183_v28  ;;  %v8097_v27 = vld [vmem:[#allocation5 + $0x838] sm:$0xff]  }
 0x108   :  { %7250 = vmatpush3.bf16.msra.mxu0 %v8037_v54  ;;  %v8080_v54 = vld [vmem:[#allocation5 + $0x7d8] sm:$0xff]  }
 0x109   :  { %7272 = vmatpush3.bf16.msra.mxu1 %v8038_v55  ;;  %7251 = vmatprep.subr.bf16.mxu0 %v8039_v56  ;;  %v8081_v55 = vld [vmem:[#allocation5 + $0x718] sm:$0xff]  }
 0x10a   :  { %7273 = vmatprep.subr.bf16.mxu1 %v8040_v57  ;;  %v8082_v56 = vld [vmem:[#allocation5 + $0x798] sm:$0xff]   ;;  %v8083_v57 = vld [vmem:[#allocation5 + $0x750] sm:$0xff]  }
 0x10b   :  { %v8098_v28 = vld [vmem:[#allocation5 + $0x8b8] sm:$0xff]  }
 0x10c   :  { %7252 = vmatpush3.bf16.msra.mxu0 %v8041_v58  ;;  %v8084_v58 = vld [vmem:[#allocation5 + $0x7d0] sm:$0xff]  }
 0x10d   :  { %7274 = vmatpush3.bf16.msra.mxu1 %v8042_v59  ;;  %7253 = vmatprep.subr.bf16.mxu0 %v8043_v60  ;;  %v8085_v59 = vld [vmem:[#allocation5 + $0x710] sm:$0xff]  }
 0x10e   :  { %7275 = vmatprep.subr.bf16.mxu1 %v8044_v61  ;;  %v8086_v60 = vld [vmem:[#allocation5 + $0x790] sm:$0xff]   ;;  %v8087_v61 = vld [vmem:[#allocation5 + $0x748] sm:$0xff]  }
 0x110   :  { %7254 = vmatpush3.bf16.msra.mxu0 %v8045_v62  ;;  %v8088_v62 = vld [vmem:[#allocation5 + $0x7c8] sm:$0xff]  }
 0x111   :  { %7276 = vmatpush3.bf16.msra.mxu1 %v8046_v63  ;;  %7255 = vmatprep.subr.bf16.mxu0 %v8047_v0  ;;  %v8089_v63 = vld [vmem:[#allocation5 + $0x708] sm:$0xff]  }
 0x112   :  { %7277 = vmatprep.subr.bf16.mxu1 %v8048_v1  ;;  %v8090_v0 = vld [vmem:[#allocation5 + $0x788] sm:$0xff]  }
 0x114   :  { %7256 = vmatpush3.bf16.msra.mxu0 %v8049_v2  ;;  %v8091_v2 = vld [vmem:[#allocation5 + $0x740] sm:$0xff]  }
 0x115   :  { %7278 = vmatpush3.bf16.msra.mxu1 %v8050_v3  ;;  %7257 = vmatprep.subr.bf16.mxu0 %v8051_v4  ;;  %v8092_v4 = vld [vmem:[#allocation5 + $0x7c0] sm:$0xff]  }
 0x116   :  { %7279 = vmatprep.subr.bf16.mxu1 %v8052_v5 }
 0x118   :  { %7258 = vmatpush3.bf16.msra.mxu0 %v8053_v6  ;;  %v8093_v6 = vld [vmem:[#allocation5 + $0x700] sm:$0xff]  }
 0x119   :  { %7280 = vmatpush3.bf16.msra.mxu1 %v8054_v7  ;;  %7259 = vmatprep.subr.bf16.mxu0 %v8055_v8 }
 0x11a   :  { %7281 = vmatprep.subr.bf16.mxu1 %v8056_v9  ;;  %v8094_v9 = vld [vmem:[#allocation5 + $0x780] sm:$0xff]  }
 0x11c   :  { %7260 = vmatpush3.bf16.msra.mxu0 %v8057_v10  ;;  %v113_v10 = vld [vmem:[#allocation2 + $0xe8] sm:$0xff] }
 0x11d   :  { %7282 = vmatpush3.bf16.msra.mxu1 %v8058_v11  ;;  %7261 = vmatprep.subr.bf16.mxu0 %v8059_v12 }
 0x11e   :  { %7283 = vmatprep.subr.bf16.mxu1 %v8060_v15  ;;  %v112_v15 = vld [vmem:[#allocation2 + $0xe0] sm:$0xff] }
 0x120   :  { %7262 = vmatpush3.bf16.msra.mxu0 %v8061_v16  ;;  %v114_v16 = vld [vmem:[#allocation2 + $0xf0] sm:$0xff] }
 0x121   :  { %7284 = vmatpush3.bf16.msra.mxu1 %v8062_v19  ;;  %7291 = vmatprep.subr.bf16.mxu0 %v8063_v32  ;;  %v8102_v32 = vld [vmem:[#allocation5 + $0x8b0] sm:$0xff]  }
 0x122   :  { %7313 = vmatprep.subr.bf16.mxu1 %v8064_v35  ;;  %v8105_v35 = vld [vmem:[#allocation5 + $0x828] sm:$0xff]  }
 0x123   :  { %v6999_v13 = vpop.f32.mrf.mxu0  ;;  %5356 = vmatmul.mubr.bf16.vlgmr.msra.gmra.mxu0 %v180_v29  ;;  %v8099_v29 = vld [vmem:[#allocation5 + $0x870] sm:$0xff]  }
 0x124   :  { %v7021_v14 = vpop.f32.mrf.mxu1  ;;  %5396 = vmatmul.mubr.bf16.vlgmr.msra.gmra.mxu1 %v182_v31  ;;  %7292 = vmatpush3.bf16.msra.mxu0 %v8065_v36  ;;  %v8101_v31 = vld [vmem:[#allocation5 + $0x830] sm:$0xff]   ;;  %v8106_v36 = vld [vmem:[#allocation5 + $0x8a8] sm:$0xff]  }
 0x125   :  { %v7000_v17 = vpop.f32.mrf.mxu0  ;;  %7314 = vmatpush3.bf16.msra.mxu1 %v8066_v37  ;;  %7293 = vmatprep.subr.bf16.mxu0 %v8067_v40  ;;  %v8107_v37 = vld [vmem:[#allocation5 + $0x860] sm:$0xff]  }
 0x126   :  { %v7022_v18 = vpop.f32.mrf.mxu1  ;;  %v7001_v20 = vadd.f32 %v7000_v17, %v6999_v13  ;;  %7315 = vmatprep.subr.bf16.mxu1 %v8068_v41  ;;  %v185_v13 = vpack.c.bf16 %v113_v10, %v113_v10  ;;  %v8110_v40 = vld [vmem:[#allocation5 + $0x8a0] sm:$0xff]   ;;  %v8111_v41 = vld [vmem:[#allocation5 + $0x858] sm:$0xff]  }
 0x127   :  { %v7023_v21 = vadd.f32 %v7022_v18, %v7021_v14  ;;  %v7002_v25 = vpop.f32.mrf.mxu0  ;;  %v115_v14 = vld [vmem:[#allocation2 + $0xf8] sm:$0xff] }
 0x128   :  { %v7024_v26 = vpop.f32.mrf.mxu1  ;;  %v4878_v39 = vadd.f32 %v7001_v20, %v6405_v38  ;;  %7294 = vmatpush3.bf16.msra.mxu0 %v8069_v43  ;;  %v187_v19 = vpack.c.bf16 %v115_v14, %v115_v14  ;;  %v184_v20 = vpack.c.bf16 %v112_v15, %v112_v15  ;;  %5435 = vmatprep.mubr.bf16.mxu0 %v185_v13  ;;  %v8108_v38 = vld [vmem:[#allocation5 + $0x8e0] sm:$0xff]   ;;  %v8113_v43 = vld [vmem:[#allocation5 + $0x818] sm:$0xff]  }
 0x129   :  { %v7003_v33 = vpop.f32.mrf.mxu0  ;;  %7316 = vmatpush3.bf16.msra.mxu1 %v8070_v44  ;;  %7295 = vmatprep.subr.bf16.mxu0 %v8071_v45  ;;  %v8114_v44 = vld [vmem:[#allocation5 + $0x898] sm:$0xff]   ;;  %v8115_v45 = vld [vmem:[#allocation5 + $0x850] sm:$0xff]  }
 0x12a   :  { %v7025_v34 = vpop.f32.mrf.mxu1  ;;  %v8604_v42 = vadd.f32 %v7023_v21, %v4878_v39  ;;  %7317 = vmatprep.subr.bf16.mxu1 %v8072_v46  ;;  %v186_v21 = vpack.c.bf16 %v114_v16, %v114_v16  ;;  %5475 = vmatprep.mubr.bf16.mxu1 %v187_v19  ;;  %v8103_v33 = vld [vmem:[#allocation5 + $0x868] sm:$0xff]   ;;  %v8109_v39 = vld [vmem:[#allocation5 + $0x820] sm:$0xff]   ;;  %v8116_v46 = vld [vmem:[#allocation5 + $0x8d0] sm:$0xff]  }
 0x12b   :  { %v8104_v34 = vld [vmem:[#allocation5 + $0x8e8] sm:$0xff]   ;;  %v8128_v14 = vld [vmem:[#allocation5 + $0x9f8] sm:$0xff]   ;;  %v8133_v19 = vld [vmem:[#allocation5 + $0x930] sm:$0xff]  }
 0x12c   :  { %7296 = vmatpush3.bf16.msra.mxu0 %v8073_v47  ;;  %v8117_v47 = vld [vmem:[#allocation5 + $0x810] sm:$0xff]   ;;  %v8129_v15 = vld [vmem:[#allocation5 + $0x938] sm:$0xff]  }
 0x12d   :  { %7318 = vmatpush3.bf16.msra.mxu1 %v8074_v48  ;;  %7297 = vmatprep.subr.bf16.mxu0 %v8075_v49  ;;  %v8118_v48 = vld [vmem:[#allocation5 + $0x890] sm:$0xff]   ;;  %v8119_v49 = vld [vmem:[#allocation5 + $0x848] sm:$0xff]   ;;  %v8130_v16 = vld [vmem:[#allocation5 + $0x9b8] sm:$0xff]  }
 0x12e   :  { %7319 = vmatprep.subr.bf16.mxu1 %v8076_v50  ;;  %v8120_v50 = vld [vmem:[#allocation5 + $0x8c8] sm:$0xff]  }
 0x130   :  { %7298 = vmatpush3.bf16.msra.mxu0 %v8077_v51  ;;  %v8121_v51 = vld [vmem:[#allocation5 + $0x808] sm:$0xff]  }
 0x131   :  { %7320 = vmatpush3.bf16.msra.mxu1 %v8078_v52  ;;  %7299 = vmatprep.subr.bf16.mxu0 %v8079_v53  ;;  %v8122_v52 = vld [vmem:[#allocation5 + $0x888] sm:$0xff]  }
 0x132   :  { %7321 = vmatprep.subr.bf16.mxu1 %v8080_v54  ;;  %v8123_v54 = vld [vmem:[#allocation5 + $0x840] sm:$0xff]  }
 0x134   :  { %7300 = vmatpush3.bf16.msra.mxu0 %v8081_v55 }
 0x135   :  { %7322 = vmatpush3.bf16.msra.mxu1 %v8082_v56  ;;  %7301 = vmatprep.subr.bf16.mxu0 %v8083_v57  ;;  %v8124_v56 = vld [vmem:[#allocation5 + $0x8c0] sm:$0xff]  }
 0x136   :  { %7323 = vmatprep.subr.bf16.mxu1 %v8084_v58  ;;  %v8125_v58 = vld [vmem:[#allocation5 + $0x800] sm:$0xff]  }
 0x138   :  { %7302 = vmatpush3.bf16.msra.mxu0 %v8085_v59 }
 0x139   :  { %7324 = vmatpush3.bf16.msra.mxu1 %v8086_v60  ;;  %7303 = vmatprep.subr.bf16.mxu0 %v8087_v61  ;;  %v8126_v61 = vld [vmem:[#allocation5 + $0x880] sm:$0xff]  }
 0x13a   :  { %7325 = vmatprep.subr.bf16.mxu1 %v8088_v62 }
 0x13c   :  { %7304 = vmatpush3.bf16.msra.mxu0 %v8089_v63 }
 0x13d   :  { %7326 = vmatpush3.bf16.msra.mxu1 %v8090_v0  ;;  %7305 = vmatprep.subr.bf16.mxu0 %v8091_v2  ;;  %v117_v0 = vld [vmem:[#allocation2 + $0x108] sm:$0xff]  ;;  %v116_v2 = vld [vmem:[#allocation2 + $0x100] sm:$0xff] }
 0x13e   :  { %7327 = vmatprep.subr.bf16.mxu1 %v8092_v4 }
 0x140   :  { %7306 = vmatpush3.bf16.msra.mxu0 %v8093_v6 }
 0x141   :  { %7328 = vmatpush3.bf16.msra.mxu1 %v8094_v9  ;;  %7335 = vmatprep.subr.bf16.mxu0 %v8095_v22  ;;  %v8136_v22 = vld [vmem:[#allocation5 + $0x9e8] sm:$0xff]  }
 0x142   :  { %7357 = vmatprep.subr.bf16.mxu1 %v8096_v24  ;;  %v8138_v24 = vld [vmem:[#allocation5 + $0x9a8] sm:$0xff]  }
 0x143   :  { %v7043_v1 = vpop.f32.mrf.mxu0  ;;  %5436 = vmatmul.mubr.bf16.vlgmr.msra.gmra.mxu0 %v184_v20  ;;  %v8134_v20 = vld [vmem:[#allocation5 + $0x9b0] sm:$0xff]  }
 0x144   :  { %v7065_v3 = vpop.f32.mrf.mxu1  ;;  %5476 = vmatmul.mubr.bf16.vlgmr.msra.gmra.mxu1 %v186_v21  ;;  %7336 = vmatpush3.bf16.msra.mxu0 %v8097_v27  ;;  %v8135_v21 = vld [vmem:[#allocation5 + $0x968] sm:$0xff]   ;;  %v8141_v27 = vld [vmem:[#allocation5 + $0x920] sm:$0xff]  }
 0x145   :  { %v7044_v5 = vpop.f32.mrf.mxu0  ;;  %7358 = vmatpush3.bf16.msra.mxu1 %v8098_v28  ;;  %7337 = vmatprep.subr.bf16.mxu0 %v8099_v29  ;;  %v8142_v28 = vld [vmem:[#allocation5 + $0x9a0] sm:$0xff]   ;;  %v8143_v29 = vld [vmem:[#allocation5 + $0x958] sm:$0xff]  }
 0x146   :  { %v7045_v7 = vadd.f32 %v7044_v5, %v7043_v1  ;;  %v7066_v8 = vpop.f32.mrf.mxu1  ;;  %7359 = vmatprep.subr.bf16.mxu1 %v8100_v30  ;;  %v119_v1 = vld [vmem:[#allocation2 + $0x118] sm:$0xff]  ;;  %v189_v5 = vpack.c.bf16 %v117_v0, %v117_v0 }
 0x147   :  { %v7067_v11 = vadd.f32 %v7066_v8, %v7065_v3  ;;  %v7046_v12 = vpop.f32.mrf.mxu0  ;;  %v191_v6 = vpack.c.bf16 %v119_v1, %v119_v1  ;;  %v118_v8 = vld [vmem:[#allocation2 + $0x110] sm:$0xff]  ;;  %v8144_v30 = vld [vmem:[#allocation5 + $0x9d8] sm:$0xff]  }
 0x148   :  { %v4958_v17 = vadd.f32 %v7045_v7, %v8604_v42  ;;  %v7068_v18 = vpop.f32.mrf.mxu1  ;;  %7338 = vmatpush3.bf16.msra.mxu0 %v8101_v31  ;;  %v8112_v42 = vld [vmem:[#allocation5 + $0x8d8] sm:$0xff]   ;;  %v188_v7 = vpack.c.bf16 %v116_v2, %v116_v2  ;;  %v190_v10 = vpack.c.bf16 %v118_v8, %v118_v8  ;;  %5515 = vmatprep.mubr.bf16.mxu0 %v189_v5  ;;  %v8163_v5 = vld [vmem:[#allocation5 + $0xa70] sm:$0xff]  }
 0x149   :  { %v7047_v23 = vpop.f32.mrf.mxu0  ;;  %7360 = vmatpush3.bf16.msra.mxu1 %v8102_v32  ;;  %7339 = vmatprep.subr.bf16.mxu0 %v8103_v33  ;;  %v8132_v18 = vld [vmem:[#allocation5 + $0x9f0] sm:$0xff]   ;;  %v8145_v31 = vld [vmem:[#allocation5 + $0x918] sm:$0xff]  }
 0x14a   :  { %v8607_v25 = vadd.f32 %v7067_v11, %v4958_v17  ;;  %v7069_v26 = vpop.f32.mrf.mxu1  ;;  %7361 = vmatprep.subr.bf16.mxu1 %v8104_v34  ;;  %v8127_v11 = vld [vmem:[#allocation5 + $0x978] sm:$0xff]   ;;  %5555 = vmatprep.mubr.bf16.mxu1 %v191_v6  ;;  %v8131_v17 = vld [vmem:[#allocation5 + $0x970] sm:$0xff]   ;;  %v8137_v23 = vld [vmem:[#allocation5 + $0x928] sm:$0xff]  }
 0x14b   :  { %v8140_v26 = vld [vmem:[#allocation5 + $0x9e0] sm:$0xff]   ;;  %v8146_v32 = vld [vmem:[#allocation5 + $0x998] sm:$0xff]   ;;  %v8147_v33 = vld [vmem:[#allocation5 + $0x950] sm:$0xff]  }
 0x14c   :  { %7340 = vmatpush3.bf16.msra.mxu0 %v8105_v35  ;;  %v8148_v34 = vld [vmem:[#allocation5 + $0x9d0] sm:$0xff]   ;;  %v8160_v1 = vld [vmem:[#allocation5 + $0xaf8] sm:$0xff]  }
 0x14d   :  { %7362 = vmatpush3.bf16.msra.mxu1 %v8106_v36  ;;  %7341 = vmatprep.subr.bf16.mxu0 %v8107_v37  ;;  %v8149_v35 = vld [vmem:[#allocation5 + $0x910] sm:$0xff]   ;;  %v8151_v37 = vld [vmem:[#allocation5 + $0x948] sm:$0xff]  }
 0x14e   :  { %7363 = vmatprep.subr.bf16.mxu1 %v8108_v38  ;;  %v8150_v36 = vld [vmem:[#allocation5 + $0x990] sm:$0xff]   ;;  %v8152_v38 = vld [vmem:[#allocation5 + $0x9c8] sm:$0xff]  }
 0x14f   :  { %v8164_v6 = vld [vmem:[#allocation5 + $0xaf0] sm:$0xff]  }
 0x150   :  { %7342 = vmatpush3.bf16.msra.mxu0 %v8109_v39  ;;  %v8153_v39 = vld [vmem:[#allocation5 + $0x908] sm:$0xff]   ;;  %v8166_v8 = vld [vmem:[#allocation5 + $0xab0] sm:$0xff]  }
 0x151   :  { %7364 = vmatpush3.bf16.msra.mxu1 %v8110_v40  ;;  %7343 = vmatprep.subr.bf16.mxu0 %v8111_v41  ;;  %v8154_v40 = vld [vmem:[#allocation5 + $0x988] sm:$0xff]  }
 0x152   :  { %7365 = vmatprep.subr.bf16.mxu1 %v8112_v42 }
 0x154   :  { %7344 = vmatpush3.bf16.msra.mxu0 %v8113_v43  ;;  %v8155_v43 = vld [vmem:[#allocation5 + $0x940] sm:$0xff]  }
 0x155   :  { %7366 = vmatpush3.bf16.msra.mxu1 %v8114_v44  ;;  %7345 = vmatprep.subr.bf16.mxu0 %v8115_v45  ;;  %v8156_v44 = vld [vmem:[#allocation5 + $0x9c0] sm:$0xff]  }
 0x156   :  { %7367 = vmatprep.subr.bf16.mxu1 %v8116_v46 }
 0x158   :  { %7346 = vmatpush3.bf16.msra.mxu0 %v8117_v47  ;;  %v8157_v47 = vld [vmem:[#allocation5 + $0x900] sm:$0xff]  }
 0x159   :  { %7368 = vmatpush3.bf16.msra.mxu1 %v8118_v48  ;;  %7347 = vmatprep.subr.bf16.mxu0 %v8119_v49 }
 0x15a   :  { %7369 = vmatprep.subr.bf16.mxu1 %v8120_v50  ;;  %v8158_v50 = vld [vmem:[#allocation5 + $0x980] sm:$0xff]  }
 0x15c   :  { %7348 = vmatpush3.bf16.msra.mxu0 %v8121_v51  ;;  %v121_v51 = vld [vmem:[#allocation2 + $0x128] sm:$0xff] }
 0x15d   :  { %7370 = vmatpush3.bf16.msra.mxu1 %v8122_v52  ;;  %7349 = vmatprep.subr.bf16.mxu0 %v8123_v54  ;;  %v123_v52 = vld [vmem:[#allocation2 + $0x138] sm:$0xff] }
 0x15e   :  { %7371 = vmatprep.subr.bf16.mxu1 %v8124_v56  ;;  %v195_v56 = vpack.c.bf16 %v123_v52, %v123_v52  ;;  %v8192_v52 = vld [vmem:[#allocation5 + $0xbf8] sm:$0xff]  }
 0x160   :  { %7350 = vmatpush3.bf16.msra.mxu0 %v8125_v58  ;;  %v122_v58 = vld [vmem:[#allocation2 + $0x130] sm:$0xff] }
 0x161   :  { %7372 = vmatpush3.bf16.msra.mxu1 %v8126_v61  ;;  %7379 = vmatprep.subr.bf16.mxu0 %v8127_v11  ;;  %v194_v61 = vpack.c.bf16 %v122_v58, %v122_v58  ;;  %v8169_v11 = vld [vmem:[#allocation5 + $0xa28] sm:$0xff]   ;;  %v8196_v58 = vld [vmem:[#allocation5 + $0xbf0] sm:$0xff]  }
 0x162   :  { %7401 = vmatprep.subr.bf16.mxu1 %v8128_v14  ;;  %v8172_v14 = vld [vmem:[#allocation5 + $0xae0] sm:$0xff]  }
 0x163   :  { %v7087_v53 = vpop.f32.mrf.mxu0  ;;  %5516 = vmatmul.mubr.bf16.vlgmr.msra.gmra.mxu0 %v188_v7  ;;  %v8165_v7 = vld [vmem:[#allocation5 + $0xa30] sm:$0xff]  }
 0x164   :  { %v7109_v55 = vpop.f32.mrf.mxu1  ;;  %5556 = vmatmul.mubr.bf16.vlgmr.msra.gmra.mxu1 %v190_v10  ;;  %7380 = vmatpush3.bf16.msra.mxu0 %v8129_v15  ;;  %v8168_v10 = vld [vmem:[#allocation5 + $0xae8] sm:$0xff]   ;;  %v8173_v15 = vld [vmem:[#allocation5 + $0xa20] sm:$0xff]  }
 0x165   :  { %v7088_v57 = vpop.f32.mrf.mxu0  ;;  %7402 = vmatpush3.bf16.msra.mxu1 %v8130_v16  ;;  %7381 = vmatprep.subr.bf16.mxu0 %v8131_v17  ;;  %v8174_v16 = vld [vmem:[#allocation5 + $0xaa0] sm:$0xff]   ;;  %v8175_v17 = vld [vmem:[#allocation5 + $0xa58] sm:$0xff]  }
 0x166   :  { %v7089_v59 = vadd.f32 %v7088_v57, %v7087_v53  ;;  %v7110_v60 = vpop.f32.mrf.mxu1  ;;  %7403 = vmatprep.subr.bf16.mxu1 %v8132_v18  ;;  %v120_v57 = vld [vmem:[#allocation2 + $0x120] sm:$0xff]  ;;  %5635 = vmatprep.mubr.bf16.mxu1 %v195_v56  ;;  %v8176_v18 = vld [vmem:[#allocation5 + $0xad8] sm:$0xff]  }
 0x167   :  { %v7111_v62 = vadd.f32 %v7110_v60, %v7109_v55  ;;  %v7090_v63 = vpop.f32.mrf.mxu0  ;;  %v193_v55 = vpack.c.bf16 %v121_v51, %v121_v51  ;;  %v192_v60 = vpack.c.bf16 %v120_v57, %v120_v57  ;;  %v8194_v56 = vld [vmem:[#allocation5 + $0xbb8] sm:$0xff]   ;;  %v8195_v57 = vld [vmem:[#allocation5 + $0xb70] sm:$0xff]  }
 0x168   :  { %v5038_v3 = vadd.f32 %v7089_v59, %v8607_v25  ;;  %v7112_v4 = vpop.f32.mrf.mxu1  ;;  %7382 = vmatpush3.bf16.msra.mxu0 %v8133_v19  ;;  %v8139_v25 = vld [vmem:[#allocation5 + $0x960] sm:$0xff]   ;;  %v8177_v19 = vld [vmem:[#allocation5 + $0xa18] sm:$0xff]  }
 0x169   :  { %v7091_v9 = vpop.f32.mrf.mxu0  ;;  %7404 = vmatpush3.bf16.msra.mxu1 %v8134_v20  ;;  %7383 = vmatprep.subr.bf16.mxu0 %v8135_v21  ;;  %v8162_v4 = vld [vmem:[#allocation5 + $0xab8] sm:$0xff]   ;;  %v8179_v21 = vld [vmem:[#allocation5 + $0xa50] sm:$0xff]  }
 0x16a   :  { %v8610_v12 = vadd.f32 %v7111_v62, %v5038_v3  ;;  %v7113_v13 = vpop.f32.mrf.mxu1  ;;  %7405 = vmatprep.subr.bf16.mxu1 %v8136_v22  ;;  %v8159_v62 = vld [vmem:[#allocation5 + $0xa78] sm:$0xff]   ;;  %5595 = vmatprep.mubr.bf16.mxu0 %v193_v55  ;;  %v8167_v9 = vld [vmem:[#allocation5 + $0xa68] sm:$0xff]   ;;  %v8180_v22 = vld [vmem:[#allocation5 + $0xad0] sm:$0xff]  }
 0x16b   :  { %v8161_v3 = vld [vmem:[#allocation5 + $0xa38] sm:$0xff]   ;;  %v8171_v13 = vld [vmem:[#allocation5 + $0xa60] sm:$0xff]  }
 0x16c   :  { %7384 = vmatpush3.bf16.msra.mxu0 %v8137_v23  ;;  %v8178_v20 = vld [vmem:[#allocation5 + $0xa98] sm:$0xff]   ;;  %v8181_v23 = vld [vmem:[#allocation5 + $0xa10] sm:$0xff]  }
 0x16d   :  { %7406 = vmatpush3.bf16.msra.mxu1 %v8138_v24  ;;  %7385 = vmatprep.subr.bf16.mxu0 %v8139_v25  ;;  %v8182_v24 = vld [vmem:[#allocation5 + $0xa90] sm:$0xff]   ;;  %v8183_v25 = vld [vmem:[#allocation5 + $0xa48] sm:$0xff]   ;;  %v8193_v55 = vld [vmem:[#allocation5 + $0xb38] sm:$0xff]  }
 0x16e   :  { %7407 = vmatprep.subr.bf16.mxu1 %v8140_v26  ;;  %v8184_v26 = vld [vmem:[#allocation5 + $0xac8] sm:$0xff]  }
 0x170   :  { %7386 = vmatpush3.bf16.msra.mxu0 %v8141_v27  ;;  %v8185_v27 = vld [vmem:[#allocation5 + $0xa08] sm:$0xff]  }
 0x171   :  { %7408 = vmatpush3.bf16.msra.mxu1 %v8142_v28  ;;  %7387 = vmatprep.subr.bf16.mxu0 %v8143_v29  ;;  %v8186_v28 = vld [vmem:[#allocation5 + $0xa88] sm:$0xff]  }
 0x172   :  { %7409 = vmatprep.subr.bf16.mxu1 %v8144_v30  ;;  %v8187_v30 = vld [vmem:[#allocation5 + $0xa40] sm:$0xff]  }
 0x174   :  { %7388 = vmatpush3.bf16.msra.mxu0 %v8145_v31 }
 0x175   :  { %7410 = vmatpush3.bf16.msra.mxu1 %v8146_v32  ;;  %7389 = vmatprep.subr.bf16.mxu0 %v8147_v33  ;;  %v8188_v32 = vld [vmem:[#allocation5 + $0xac0] sm:$0xff]  }
 0x176   :  { %7411 = vmatprep.subr.bf16.mxu1 %v8148_v34  ;;  %v8189_v34 = vld [vmem:[#allocation5 + $0xa00] sm:$0xff]  }
 0x178   :  { %7390 = vmatpush3.bf16.msra.mxu0 %v8149_v35 }
 0x179   :  { %7412 = vmatpush3.bf16.msra.mxu1 %v8150_v36  ;;  %7391 = vmatprep.subr.bf16.mxu0 %v8151_v37  ;;  %v8190_v37 = vld [vmem:[#allocation5 + $0xa80] sm:$0xff]  }
 0x17a   :  { %7413 = vmatprep.subr.bf16.mxu1 %v8152_v38  ;;  %v125_v38 = vld [vmem:[#allocation2 + $0x148] sm:$0xff] }
 0x17c   :  { %7392 = vmatpush3.bf16.msra.mxu0 %v8153_v39 }
 0x17d   :  { %7414 = vmatpush3.bf16.msra.mxu1 %v8154_v40  ;;  %7393 = vmatprep.subr.bf16.mxu0 %v8155_v43  ;;  %v124_v43 = vld [vmem:[#allocation2 + $0x140] sm:$0xff] }
 0x17e   :  { %7415 = vmatprep.subr.bf16.mxu1 %v8156_v44  ;;  %v126_v44 = vld [vmem:[#allocation2 + $0x150] sm:$0xff] }
 0x180   :  { %7394 = vmatpush3.bf16.msra.mxu0 %v8157_v47 }
 0x181   :  { %7416 = vmatpush3.bf16.msra.mxu1 %v8158_v50  ;;  %7423 = vmatprep.subr.bf16.mxu0 %v8159_v62  ;;  %v8191_v50 = vld [vmem:[#allocation5 + $0xb78] sm:$0xff]   ;;  %v8200_v62 = vld [vmem:[#allocation5 + $0xbe8] sm:$0xff]  }
 0x182   :  { %7445 = vmatprep.subr.bf16.mxu1 %v8160_v1  ;;  %v8203_v1 = vld [vmem:[#allocation5 + $0xb60] sm:$0xff]  }
 0x183   :  { %v7131_v41 = vpop.f32.mrf.mxu0  ;;  %5596 = vmatmul.mubr.bf16.vlgmr.msra.gmra.mxu0 %v192_v60  ;;  %v8198_v60 = vld [vmem:[#allocation5 + $0xbb0] sm:$0xff]  }
 0x184   :  { %v7153_v42 = vpop.f32.mrf.mxu1  ;;  %5636 = vmatmul.mubr.bf16.vlgmr.msra.gmra.mxu1 %v194_v61  ;;  %7424 = vmatpush3.bf16.msra.mxu0 %v8161_v3  ;;  %v8199_v61 = vld [vmem:[#allocation5 + $0xb68] sm:$0xff]   ;;  %v8205_v3 = vld [vmem:[#allocation5 + $0xb20] sm:$0xff]  }
 0x185   :  { %v7132_v45 = vpop.f32.mrf.mxu0  ;;  %7446 = vmatpush3.bf16.msra.mxu1 %v8162_v4  ;;  %7425 = vmatprep.subr.bf16.mxu0 %v8163_v5  ;;  %v8206_v4 = vld [vmem:[#allocation5 + $0xba0] sm:$0xff]   ;;  %v8207_v5 = vld [vmem:[#allocation5 + $0xb58] sm:$0xff]  }
 0x186   :  { %v7154_v46 = vpop.f32.mrf.mxu1  ;;  %v7133_v48 = vadd.f32 %v7132_v45, %v7131_v41  ;;  %7447 = vmatprep.subr.bf16.mxu1 %v8164_v6  ;;  %v197_v41 = vpack.c.bf16 %v125_v38, %v125_v38  ;;  %v8208_v6 = vld [vmem:[#allocation5 + $0xbd8] sm:$0xff]  }
 0x187   :  { %v7155_v49 = vadd.f32 %v7154_v46, %v7153_v42  ;;  %v7134_v53 = vpop.f32.mrf.mxu0  ;;  %v127_v42 = vld [vmem:[#allocation2 + $0x158] sm:$0xff] }
 0x188   :  { %v7156_v54 = vpop.f32.mrf.mxu1  ;;  %v5118_v59 = vadd.f32 %v7133_v48, %v8610_v12  ;;  %7426 = vmatpush3.bf16.msra.mxu0 %v8165_v7  ;;  %v8170_v12 = vld [vmem:[#allocation5 + $0xaa8] sm:$0xff]   ;;  %v199_v47 = vpack.c.bf16 %v127_v42, %v127_v42  ;;  %v196_v48 = vpack.c.bf16 %v124_v43, %v124_v43  ;;  %5675 = vmatprep.mubr.bf16.mxu0 %v197_v41  ;;  %v8209_v7 = vld [vmem:[#allocation5 + $0xb18] sm:$0xff]  }
 0x189   :  { %v7135_v63 = vpop.f32.mrf.mxu0  ;;  %7448 = vmatpush3.bf16.msra.mxu1 %v8166_v8  ;;  %7427 = vmatprep.subr.bf16.mxu0 %v8167_v9  ;;  %v8210_v8 = vld [vmem:[#allocation5 + $0xb98] sm:$0xff]   ;;  %v8211_v9 = vld [vmem:[#allocation5 + $0xb50] sm:$0xff]  }
 0x18a   :  { %v7157_v0 = vpop.f32.mrf.mxu1  ;;  %v8613_v2 = vadd.f32 %v7155_v49, %v5118_v59  ;;  %7449 = vmatprep.subr.bf16.mxu1 %v8168_v10  ;;  %v198_v49 = vpack.c.bf16 %v126_v44, %v126_v44  ;;  %5715 = vmatprep.mubr.bf16.mxu1 %v199_v47  ;;  %v8197_v59 = vld [vmem:[#allocation5 + $0xb30] sm:$0xff]   ;;  %v8201_v63 = vld [vmem:[#allocation5 + $0xb28] sm:$0xff]   ;;  %v8224_v42 = vld [vmem:[#allocation5 + $0xcf8] sm:$0xff]  }
 0x18b   :  { %v8202_v0 = vld [vmem:[#allocation5 + $0xba8] sm:$0xff]   ;;  %v8212_v10 = vld [vmem:[#allocation5 + $0xbd0] sm:$0xff]   ;;  %v8225_v43 = vld [vmem:[#allocation5 + $0xc38] sm:$0xff]  }
 0x18c   :  { %7428 = vmatpush3.bf16.msra.mxu0 %v8169_v11  ;;  %v8213_v11 = vld [vmem:[#allocation5 + $0xb10] sm:$0xff]   ;;  %v8226_v44 = vld [vmem:[#allocation5 + $0xcb8] sm:$0xff]  }
 0x18d   :  { %7450 = vmatpush3.bf16.msra.mxu1 %v8170_v12  ;;  %7429 = vmatprep.subr.bf16.mxu0 %v8171_v13  ;;  %v8214_v12 = vld [vmem:[#allocation5 + $0xb90] sm:$0xff]   ;;  %v8215_v13 = vld [vmem:[#allocation5 + $0xb48] sm:$0xff]  }
 0x18e   :  { %7451 = vmatprep.subr.bf16.mxu1 %v8172_v14  ;;  %v8216_v14 = vld [vmem:[#allocation5 + $0xbc8] sm:$0xff]   ;;  %v8229_v47 = vld [vmem:[#allocation5 + $0xc30] sm:$0xff]  }
 0x190   :  { %7430 = vmatpush3.bf16.msra.mxu0 %v8173_v15  ;;  %v8217_v15 = vld [vmem:[#allocation5 + $0xb08] sm:$0xff]  }
 0x191   :  { %7452 = vmatpush3.bf16.msra.mxu1 %v8174_v16  ;;  %7431 = vmatprep.subr.bf16.mxu0 %v8175_v17  ;;  %v8218_v16 = vld [vmem:[#allocation5 + $0xb88] sm:$0xff]  }
 0x192   :  { %7453 = vmatprep.subr.bf16.mxu1 %v8176_v18  ;;  %v8219_v18 = vld [vmem:[#allocation5 + $0xb40] sm:$0xff]  }
 0x194   :  { %7432 = vmatpush3.bf16.msra.mxu0 %v8177_v19 }
 0x195   :  { %7454 = vmatpush3.bf16.msra.mxu1 %v8178_v20  ;;  %7433 = vmatprep.subr.bf16.mxu0 %v8179_v21  ;;  %v8220_v20 = vld [vmem:[#allocation5 + $0xbc0] sm:$0xff]  }
 0x196   :  { %7455 = vmatprep.subr.bf16.mxu1 %v8180_v22  ;;  %v8221_v22 = vld [vmem:[#allocation5 + $0xb00] sm:$0xff]  }
 0x198   :  { %7434 = vmatpush3.bf16.msra.mxu0 %v8181_v23 }
 0x199   :  { %7456 = vmatpush3.bf16.msra.mxu1 %v8182_v24  ;;  %7435 = vmatprep.subr.bf16.mxu0 %v8183_v25  ;;  %v8222_v25 = vld [vmem:[#allocation5 + $0xb80] sm:$0xff]  }
 0x19a   :  { %7457 = vmatprep.subr.bf16.mxu1 %v8184_v26 }
 0x19c   :  { %7436 = vmatpush3.bf16.msra.mxu0 %v8185_v27 }
 0x19d   :  { %7458 = vmatpush3.bf16.msra.mxu1 %v8186_v28  ;;  %7437 = vmatprep.subr.bf16.mxu0 %v8187_v30  ;;  %v129_v28 = vld [vmem:[#allocation2 + $0x168] sm:$0xff]  ;;  %v128_v30 = vld [vmem:[#allocation2 + $0x160] sm:$0xff] }
 0x19e   :  { %7459 = vmatprep.subr.bf16.mxu1 %v8188_v32 }
 0x1a0   :  { %7438 = vmatpush3.bf16.msra.mxu0 %v8189_v34 }
 0x1a1   :  { %7460 = vmatpush3.bf16.msra.mxu1 %v8190_v37  ;;  %7467 = vmatprep.subr.bf16.mxu0 %v8191_v50  ;;  %v8232_v50 = vld [vmem:[#allocation5 + $0xce8] sm:$0xff]  }
 0x1a2   :  { %7489 = vmatprep.subr.bf16.mxu1 %v8192_v52  ;;  %v8234_v52 = vld [vmem:[#allocation5 + $0xca8] sm:$0xff]  }
 0x1a3   :  { %v7175_v29 = vpop.f32.mrf.mxu0  ;;  %5676 = vmatmul.mubr.bf16.vlgmr.msra.gmra.mxu0 %v196_v48  ;;  %v8230_v48 = vld [vmem:[#allocation5 + $0xcb0] sm:$0xff]  }
 0x1a4   :  { %v7197_v31 = vpop.f32.mrf.mxu1  ;;  %5716 = vmatmul.mubr.bf16.vlgmr.msra.gmra.mxu1 %v198_v49  ;;  %7468 = vmatpush3.bf16.msra.mxu0 %v8193_v55  ;;  %v8231_v49 = vld [vmem:[#allocation5 + $0xc68] sm:$0xff]   ;;  %v8237_v55 = vld [vmem:[#allocation5 + $0xc20] sm:$0xff]  }
 0x1a5   :  { %v7176_v33 = vpop.f32.mrf.mxu0  ;;  %7490 = vmatpush3.bf16.msra.mxu1 %v8194_v56  ;;  %7469 = vmatprep.subr.bf16.mxu0 %v8195_v57  ;;  %v8238_v56 = vld [vmem:[#allocation5 + $0xca0] sm:$0xff]   ;;  %v8239_v57 = vld [vmem:[#allocation5 + $0xc58] sm:$0xff]  }
 0x1a6   :  { %v7177_v35 = vadd.f32 %v7176_v33, %v7175_v29  ;;  %v7198_v36 = vpop.f32.mrf.mxu1  ;;  %7491 = vmatprep.subr.bf16.mxu1 %v8196_v58  ;;  %v131_v29 = vld [vmem:[#allocation2 + $0x178] sm:$0xff]  ;;  %v201_v33 = vpack.c.bf16 %v129_v28, %v129_v28 }
 0x1a7   :  { %v7199_v39 = vadd.f32 %v7198_v36, %v7197_v31  ;;  %v7178_v40 = vpop.f32.mrf.mxu0  ;;  %v203_v34 = vpack.c.bf16 %v131_v29, %v131_v29  ;;  %v130_v36 = vld [vmem:[#allocation2 + $0x170] sm:$0xff]  ;;  %v8240_v58 = vld [vmem:[#allocation5 + $0xcd8] sm:$0xff]  }
 0x1a8   :  { %v5198_v45 = vadd.f32 %v7177_v35, %v8613_v2  ;;  %v7200_v46 = vpop.f32.mrf.mxu1  ;;  %7470 = vmatpush3.bf16.msra.mxu0 %v8197_v59  ;;  %v8204_v2 = vld [vmem:[#allocation5 + $0xbe0] sm:$0xff]   ;;  %v200_v35 = vpack.c.bf16 %v128_v30, %v128_v30  ;;  %v202_v38 = vpack.c.bf16 %v130_v36, %v130_v36  ;;  %5755 = vmatprep.mubr.bf16.mxu0 %v201_v33  ;;  %v8241_v59 = vld [vmem:[#allocation5 + $0xc18] sm:$0xff]   ;;  %v8259_v33 = vld [vmem:[#allocation5 + $0xd70] sm:$0xff]  }
 0x1a9   :  { %v7179_v51 = vpop.f32.mrf.mxu0  ;;  %7492 = vmatpush3.bf16.msra.mxu1 %v8198_v60  ;;  %7471 = vmatprep.subr.bf16.mxu0 %v8199_v61  ;;  %v8228_v46 = vld [vmem:[#allocation5 + $0xcf0] sm:$0xff]   ;;  %v8242_v60 = vld [vmem:[#allocation5 + $0xc98] sm:$0xff]  }
 0x1aa   :  { %v8616_v53 = vadd.f32 %v7199_v39, %v5198_v45  ;;  %v7201_v54 = vpop.f32.mrf.mxu1  ;;  %7493 = vmatprep.subr.bf16.mxu1 %v8200_v62  ;;  %v8223_v39 = vld [vmem:[#allocation5 + $0xc78] sm:$0xff]   ;;  %5795 = vmatprep.mubr.bf16.mxu1 %v203_v34  ;;  %v8227_v45 = vld [vmem:[#allocation5 + $0xc70] sm:$0xff]   ;;  %v8233_v51 = vld [vmem:[#allocation5 + $0xc28] sm:$0xff]  }
 0x1ab   :  { %v8236_v54 = vld [vmem:[#allocation5 + $0xce0] sm:$0xff]   ;;  %v8243_v61 = vld [vmem:[#allocation5 + $0xc50] sm:$0xff]   ;;  %v8256_v29 = vld [vmem:[#allocation5 + $0xdf8] sm:$0xff]  }
 0x1ac   :  { %7472 = vmatpush3.bf16.msra.mxu0 %v8201_v63  ;;  %v8244_v62 = vld [vmem:[#allocation5 + $0xcd0] sm:$0xff]  }
 0x1ad   :  { %7494 = vmatpush3.bf16.msra.mxu1 %v8202_v0  ;;  %7473 = vmatprep.subr.bf16.mxu0 %v8203_v1  ;;  %v8245_v63 = vld [vmem:[#allocation5 + $0xc10] sm:$0xff]   ;;  %v8247_v1 = vld [vmem:[#allocation5 + $0xc48] sm:$0xff]  }
 0x1ae   :  { %7495 = vmatprep.subr.bf16.mxu1 %v8204_v2  ;;  %v8246_v0 = vld [vmem:[#allocation5 + $0xc90] sm:$0xff]   ;;  %v8248_v2 = vld [vmem:[#allocation5 + $0xcc8] sm:$0xff]  }
 0x1af   :  { %v8260_v34 = vld [vmem:[#allocation5 + $0xdf0] sm:$0xff]  }
 0x1b0   :  { %7474 = vmatpush3.bf16.msra.mxu0 %v8205_v3  ;;  %v8249_v3 = vld [vmem:[#allocation5 + $0xc08] sm:$0xff]   ;;  %v8262_v36 = vld [vmem:[#allocation5 + $0xdb0] sm:$0xff]  }
 0x1b1   :  { %7496 = vmatpush3.bf16.msra.mxu1 %v8206_v4  ;;  %7475 = vmatprep.subr.bf16.mxu0 %v8207_v5  ;;  %v8250_v4 = vld [vmem:[#allocation5 + $0xc88] sm:$0xff]  }
 0x1b2   :  { %7497 = vmatprep.subr.bf16.mxu1 %v8208_v6 }
 0x1b4   :  { %7476 = vmatpush3.bf16.msra.mxu0 %v8209_v7  ;;  %v8251_v7 = vld [vmem:[#allocation5 + $0xc40] sm:$0xff]  }
 0x1b5   :  { %7498 = vmatpush3.bf16.msra.mxu1 %v8210_v8  ;;  %7477 = vmatprep.subr.bf16.mxu0 %v8211_v9  ;;  %v8252_v8 = vld [vmem:[#allocation5 + $0xcc0] sm:$0xff]  }
 0x1b6   :  { %7499 = vmatprep.subr.bf16.mxu1 %v8212_v10 }
 0x1b8   :  { %7478 = vmatpush3.bf16.msra.mxu0 %v8213_v11  ;;  %v8253_v11 = vld [vmem:[#allocation5 + $0xc00] sm:$0xff]  }
 0x1b9   :  { %7500 = vmatpush3.bf16.msra.mxu1 %v8214_v12  ;;  %7479 = vmatprep.subr.bf16.mxu0 %v8215_v13 }
 0x1ba   :  { %7501 = vmatprep.subr.bf16.mxu1 %v8216_v14  ;;  %v8254_v14 = vld [vmem:[#allocation5 + $0xc80] sm:$0xff]  }
 0x1bc   :  { %7480 = vmatpush3.bf16.msra.mxu0 %v8217_v15  ;;  %v133_v15 = vld [vmem:[#allocation2 + $0x188] sm:$0xff] }
 0x1bd   :  { %7502 = vmatpush3.bf16.msra.mxu1 %v8218_v16  ;;  %7481 = vmatprep.subr.bf16.mxu0 %v8219_v18  ;;  %v135_v16 = vld [vmem:[#allocation2 + $0x198] sm:$0xff] }
 0x1be   :  { %7503 = vmatprep.subr.bf16.mxu1 %v8220_v20  ;;  %v207_v20 = vpack.c.bf16 %v135_v16, %v135_v16  ;;  %v8288_v16 = vld [vmem:[#allocation5 + $0xef8] sm:$0xff]  }
 0x1c0   :  { %7482 = vmatpush3.bf16.msra.mxu0 %v8221_v22  ;;  %v134_v22 = vld [vmem:[#allocation2 + $0x190] sm:$0xff] }
 0x1c1   :  { %7504 = vmatpush3.bf16.msra.mxu1 %v8222_v25  ;;  %7511 = vmatprep.subr.bf16.mxu0 %v8223_v39  ;;  %v206_v25 = vpack.c.bf16 %v134_v22, %v134_v22  ;;  %v8265_v39 = vld [vmem:[#allocation5 + $0xd28] sm:$0xff]   ;;  %v8292_v22 = vld [vmem:[#allocation5 + $0xef0] sm:$0xff]  }
 0x1c2   :  { %7533 = vmatprep.subr.bf16.mxu1 %v8224_v42  ;;  %v8268_v42 = vld [vmem:[#allocation5 + $0xde0] sm:$0xff]  }
 0x1c3   :  { %v7219_v17 = vpop.f32.mrf.mxu0  ;;  %5756 = vmatmul.mubr.bf16.vlgmr.msra.gmra.mxu0 %v200_v35  ;;  %v8261_v35 = vld [vmem:[#allocation5 + $0xd30] sm:$0xff]  }
 0x1c4   :  { %v7241_v19 = vpop.f32.mrf.mxu1  ;;  %5796 = vmatmul.mubr.bf16.vlgmr.msra.gmra.mxu1 %v202_v38  ;;  %7512 = vmatpush3.bf16.msra.mxu0 %v8225_v43  ;;  %v8264_v38 = vld [vmem:[#allocation5 + $0xde8] sm:$0xff]   ;;  %v8269_v43 = vld [vmem:[#allocation5 + $0xd20] sm:$0xff]  }
 0x1c5   :  { %v7220_v21 = vpop.f32.mrf.mxu0  ;;  %7534 = vmatpush3.bf16.msra.mxu1 %v8226_v44  ;;  %7513 = vmatprep.subr.bf16.mxu0 %v8227_v45  ;;  %v8270_v44 = vld [vmem:[#allocation5 + $0xda0] sm:$0xff]   ;;  %v8271_v45 = vld [vmem:[#allocation5 + $0xd58] sm:$0xff]  }
 0x1c6   :  { %v7221_v23 = vadd.f32 %v7220_v21, %v7219_v17  ;;  %v7242_v24 = vpop.f32.mrf.mxu1  ;;  %7535 = vmatprep.subr.bf16.mxu1 %v8228_v46  ;;  %v132_v21 = vld [vmem:[#allocation2 + $0x180] sm:$0xff]  ;;  %5875 = vmatprep.mubr.bf16.mxu1 %v207_v20  ;;  %v8272_v46 = vld [vmem:[#allocation5 + $0xdd8] sm:$0xff]  }
 0x1c7   :  { %v7243_v26 = vadd.f32 %v7242_v24, %v7241_v19  ;;  %v7222_v27 = vpop.f32.mrf.mxu0  ;;  %v205_v19 = vpack.c.bf16 %v133_v15, %v133_v15  ;;  %v204_v24 = vpack.c.bf16 %v132_v21, %v132_v21  ;;  %v8290_v20 = vld [vmem:[#allocation5 + $0xeb8] sm:$0xff]   ;;  %v8291_v21 = vld [vmem:[#allocation5 + $0xe70] sm:$0xff]  }
 0x1c8   :  { %v5278_v31 = vadd.f32 %v7221_v23, %v8616_v53  ;;  %v7244_v32 = vpop.f32.mrf.mxu1  ;;  %7514 = vmatpush3.bf16.msra.mxu0 %v8229_v47  ;;  %v8235_v53 = vld [vmem:[#allocation5 + $0xc60] sm:$0xff]   ;;  %v8273_v47 = vld [vmem:[#allocation5 + $0xd18] sm:$0xff]  }
 0x1c9   :  { %v7223_v37 = vpop.f32.mrf.mxu0  ;;  %7536 = vmatpush3.bf16.msra.mxu1 %v8230_v48  ;;  %7515 = vmatprep.subr.bf16.mxu0 %v8231_v49  ;;  %v8258_v32 = vld [vmem:[#allocation5 + $0xdb8] sm:$0xff]   ;;  %v8275_v49 = vld [vmem:[#allocation5 + $0xd50] sm:$0xff]  }
 0x1ca   :  { %v8619_v40 = vadd.f32 %v7243_v26, %v5278_v31  ;;  %v7245_v41 = vpop.f32.mrf.mxu1  ;;  %7537 = vmatprep.subr.bf16.mxu1 %v8232_v50  ;;  %v8255_v26 = vld [vmem:[#allocation5 + $0xd78] sm:$0xff]   ;;  %5835 = vmatprep.mubr.bf16.mxu0 %v205_v19  ;;  %v8263_v37 = vld [vmem:[#allocation5 + $0xd68] sm:$0xff]   ;;  %v8276_v50 = vld [vmem:[#allocation5 + $0xdd0] sm:$0xff]  }
 0x1cb   :  { %v8257_v31 = vld [vmem:[#allocation5 + $0xd38] sm:$0xff]   ;;  %v8267_v41 = vld [vmem:[#allocation5 + $0xd60] sm:$0xff]  }
 0x1cc   :  { %7516 = vmatpush3.bf16.msra.mxu0 %v8233_v51  ;;  %v8274_v48 = vld [vmem:[#allocation5 + $0xd98] sm:$0xff]   ;;  %v8277_v51 = vld [vmem:[#allocation5 + $0xd10] sm:$0xff]  }
 0x1cd   :  { %7538 = vmatpush3.bf16.msra.mxu1 %v8234_v52  ;;  %7517 = vmatprep.subr.bf16.mxu0 %v8235_v53  ;;  %v8278_v52 = vld [vmem:[#allocation5 + $0xd90] sm:$0xff]   ;;  %v8279_v53 = vld [vmem:[#allocation5 + $0xd48] sm:$0xff]   ;;  %v8289_v19 = vld [vmem:[#allocation5 + $0xe38] sm:$0xff]  }
 0x1ce   :  { %7539 = vmatprep.subr.bf16.mxu1 %v8236_v54  ;;  %v8280_v54 = vld [vmem:[#allocation5 + $0xdc8] sm:$0xff]  }
 0x1d0   :  { %7518 = vmatpush3.bf16.msra.mxu0 %v8237_v55  ;;  %v8281_v55 = vld [vmem:[#allocation5 + $0xd08] sm:$0xff]  }
 0x1d1   :  { %7540 = vmatpush3.bf16.msra.mxu1 %v8238_v56  ;;  %7519 = vmatprep.subr.bf16.mxu0 %v8239_v57  ;;  %v8282_v56 = vld [vmem:[#allocation5 + $0xd88] sm:$0xff]  }
 0x1d2   :  { %7541 = vmatprep.subr.bf16.mxu1 %v8240_v58  ;;  %v8283_v58 = vld [vmem:[#allocation5 + $0xd40] sm:$0xff]  }
 0x1d4   :  { %7520 = vmatpush3.bf16.msra.mxu0 %v8241_v59 }
 0x1d5   :  { %7542 = vmatpush3.bf16.msra.mxu1 %v8242_v60  ;;  %7521 = vmatprep.subr.bf16.mxu0 %v8243_v61  ;;  %v8284_v60 = vld [vmem:[#allocation5 + $0xdc0] sm:$0xff]  }
 0x1d6   :  { %7543 = vmatprep.subr.bf16.mxu1 %v8244_v62  ;;  %v8285_v62 = vld [vmem:[#allocation5 + $0xd00] sm:$0xff]  }
 0x1d8   :  { %7522 = vmatpush3.bf16.msra.mxu0 %v8245_v63 }
 0x1d9   :  { %7544 = vmatpush3.bf16.msra.mxu1 %v8246_v0  ;;  %7523 = vmatprep.subr.bf16.mxu0 %v8247_v1  ;;  %v8286_v1 = vld [vmem:[#allocation5 + $0xd80] sm:$0xff]  }
 0x1da   :  { %7545 = vmatprep.subr.bf16.mxu1 %v8248_v2  ;;  %v137_v2 = vld [vmem:[#allocation2 + $0x1a8] sm:$0xff] }
 0x1dc   :  { %7524 = vmatpush3.bf16.msra.mxu0 %v8249_v3 }
 0x1dd   :  { %7546 = vmatpush3.bf16.msra.mxu1 %v8250_v4  ;;  %7525 = vmatprep.subr.bf16.mxu0 %v8251_v7  ;;  %v136_v7 = vld [vmem:[#allocation2 + $0x1a0] sm:$0xff] }
 0x1de   :  { %7547 = vmatprep.subr.bf16.mxu1 %v8252_v8  ;;  %v138_v8 = vld [vmem:[#allocation2 + $0x1b0] sm:$0xff] }
 0x1e0   :  { %7526 = vmatpush3.bf16.msra.mxu0 %v8253_v11 }
 0x1e1   :  { %7548 = vmatpush3.bf16.msra.mxu1 %v8254_v14  ;;  %7555 = vmatprep.subr.bf16.mxu0 %v8255_v26  ;;  %v8287_v14 = vld [vmem:[#allocation5 + $0xe78] sm:$0xff]   ;;  %v8296_v26 = vld [vmem:[#allocation5 + $0xee8] sm:$0xff]  }
 0x1e2   :  { %7577 = vmatprep.subr.bf16.mxu1 %v8256_v29  ;;  %v8299_v29 = vld [vmem:[#allocation5 + $0xe60] sm:$0xff]  }
 0x1e3   :  { %v7263_v5 = vpop.f32.mrf.mxu0  ;;  %5836 = vmatmul.mubr.bf16.vlgmr.msra.gmra.mxu0 %v204_v24  ;;  %v8294_v24 = vld [vmem:[#allocation5 + $0xeb0] sm:$0xff]  }
 0x1e4   :  { %v7285_v6 = vpop.f32.mrf.mxu1  ;;  %5876 = vmatmul.mubr.bf16.vlgmr.msra.gmra.mxu1 %v206_v25  ;;  %7556 = vmatpush3.bf16.msra.mxu0 %v8257_v31  ;;  %v8295_v25 = vld [vmem:[#allocation5 + $0xe68] sm:$0xff]   ;;  %v8301_v31 = vld [vmem:[#allocation5 + $0xe20] sm:$0xff]  }
 0x1e5   :  { %v7264_v9 = vpop.f32.mrf.mxu0  ;;  %7578 = vmatpush3.bf16.msra.mxu1 %v8258_v32  ;;  %7557 = vmatprep.subr.bf16.mxu0 %v8259_v33  ;;  %v8302_v32 = vld [vmem:[#allocation5 + $0xea0] sm:$0xff]   ;;  %v8303_v33 = vld [vmem:[#allocation5 + $0xe58] sm:$0xff]  }
 0x1e6   :  { %v7286_v10 = vpop.f32.mrf.mxu1  ;;  %v7265_v12 = vadd.f32 %v7264_v9, %v7263_v5  ;;  %7579 = vmatprep.subr.bf16.mxu1 %v8260_v34  ;;  %v209_v5 = vpack.c.bf16 %v137_v2, %v137_v2  ;;  %v8304_v34 = vld [vmem:[#allocation5 + $0xed8] sm:$0xff]  }
 0x1e7   :  { %v7287_v13 = vadd.f32 %v7286_v10, %v7285_v6  ;;  %v7266_v17 = vpop.f32.mrf.mxu0  ;;  %v139_v6 = vld [vmem:[#allocation2 + $0x1b8] sm:$0xff] }
 0x1e8   :  { %v7288_v18 = vpop.f32.mrf.mxu1  ;;  %v5358_v23 = vadd.f32 %v7265_v12, %v8619_v40  ;;  %7558 = vmatpush3.bf16.msra.mxu0 %v8261_v35  ;;  %v8266_v40 = vld [vmem:[#allocation5 + $0xda8] sm:$0xff]   ;;  %v211_v11 = vpack.c.bf16 %v139_v6, %v139_v6  ;;  %v208_v12 = vpack.c.bf16 %v136_v7, %v136_v7  ;;  %5915 = vmatprep.mubr.bf16.mxu0 %v209_v5  ;;  %v8305_v35 = vld [vmem:[#allocation5 + $0xe18] sm:$0xff]  }
 0x1e9   :  { %v7267_v27 = vpop.f32.mrf.mxu0  ;;  %7580 = vmatpush3.bf16.msra.mxu1 %v8262_v36  ;;  %7559 = vmatprep.subr.bf16.mxu0 %v8263_v37  ;;  %v8306_v36 = vld [vmem:[#allocation5 + $0xe98] sm:$0xff]   ;;  %v8307_v37 = vld [vmem:[#allocation5 + $0xe50] sm:$0xff]  }
 0x1ea   :  { %v7289_v28 = vpop.f32.mrf.mxu1  ;;  %v8622_v30 = vadd.f32 %v7287_v13, %v5358_v23  ;;  %7581 = vmatprep.subr.bf16.mxu1 %v8264_v38  ;;  %v210_v13 = vpack.c.bf16 %v138_v8, %v138_v8  ;;  %5955 = vmatprep.mubr.bf16.mxu1 %v211_v11  ;;  %v8293_v23 = vld [vmem:[#allocation5 + $0xe30] sm:$0xff]   ;;  %v8297_v27 = vld [vmem:[#allocation5 + $0xe28] sm:$0xff]   ;;  %v8319_v2 = vld [vmem:[#allocation5 + $0xf78] sm:$0xff]  }
 0x1eb   :  { %v8298_v28 = vld [vmem:[#allocation5 + $0xea8] sm:$0xff]   ;;  %v8308_v38 = vld [vmem:[#allocation5 + $0xed0] sm:$0xff]   ;;  %v8320_v5 = vld [vmem:[#allocation5 + $0xff8] sm:$0xff]  }
 0x1ec   :  { %7560 = vmatpush3.bf16.msra.mxu0 %v8265_v39  ;;  %v8309_v39 = vld [vmem:[#allocation5 + $0xe10] sm:$0xff]   ;;  %v8321_v7 = vld [vmem:[#allocation5 + $0xf38] sm:$0xff]  }
 0x1ed   :  { %7582 = vmatpush3.bf16.msra.mxu1 %v8266_v40  ;;  %7561 = vmatprep.subr.bf16.mxu0 %v8267_v41  ;;  %v8310_v40 = vld [vmem:[#allocation5 + $0xe90] sm:$0xff]   ;;  %v8311_v41 = vld [vmem:[#allocation5 + $0xe48] sm:$0xff]   ;;  %v8322_v8 = vld [vmem:[#allocation5 + $0xfb8] sm:$0xff]  }
 0x1ee   :  { %7583 = vmatprep.subr.bf16.mxu1 %v8268_v42  ;;  %v8312_v42 = vld [vmem:[#allocation5 + $0xec8] sm:$0xff]   ;;  %v8325_v11 = vld [vmem:[#allocation5 + $0xf30] sm:$0xff]  }
 0x1f0   :  { %7562 = vmatpush3.bf16.msra.mxu0 %v8269_v43  ;;  %v8313_v43 = vld [vmem:[#allocation5 + $0xe08] sm:$0xff]  }
 0x1f1   :  { %7584 = vmatpush3.bf16.msra.mxu1 %v8270_v44  ;;  %7563 = vmatprep.subr.bf16.mxu0 %v8271_v45  ;;  %v8314_v44 = vld [vmem:[#allocation5 + $0xe88] sm:$0xff]   ;;  %v8315_v45 = vld [vmem:[#allocation5 + $0xe40] sm:$0xff]  }
 0x1f2   :  { %7585 = vmatprep.subr.bf16.mxu1 %v8272_v46 }
 0x1f4   :  { %7564 = vmatpush3.bf16.msra.mxu0 %v8273_v47 }
 0x1f5   :  { %7586 = vmatpush3.bf16.msra.mxu1 %v8274_v48  ;;  %7565 = vmatprep.subr.bf16.mxu0 %v8275_v49  ;;  %v8316_v48 = vld [vmem:[#allocation5 + $0xec0] sm:$0xff]  }
 0x1f6   :  { %7587 = vmatprep.subr.bf16.mxu1 %v8276_v50  ;;  %v8317_v49 = vld [vmem:[#allocation5 + $0xe00] sm:$0xff]  }
 0x1f8   :  { %7566 = vmatpush3.bf16.msra.mxu0 %v8277_v51 }
 0x1f9   :  { %7588 = vmatpush3.bf16.msra.mxu1 %v8278_v52  ;;  %7567 = vmatprep.subr.bf16.mxu0 %v8279_v53  ;;  %v8318_v52 = vld [vmem:[#allocation5 + $0xe80] sm:$0xff]  }
 0x1fa   :  { %7589 = vmatprep.subr.bf16.mxu1 %v8280_v54 }
 0x1fc   :  { %7568 = vmatpush3.bf16.msra.mxu0 %v8281_v55  ;;  %v141_v55 = vld [vmem:[#allocation2 + $0x1c8] sm:$0xff] }
 0x1fd   :  { %7590 = vmatpush3.bf16.msra.mxu1 %v8282_v56  ;;  %7569 = vmatprep.subr.bf16.mxu0 %v8283_v58  ;;  %v143_v56 = vld [vmem:[#allocation2 + $0x1d8] sm:$0xff] }
 0x1fe   :  { %7591 = vmatprep.subr.bf16.mxu1 %v8284_v60  ;;  %v213_v60 = vpack.c.bf16 %v141_v55, %v141_v55 }
 0x200   :  { %7570 = vmatpush3.bf16.msra.mxu0 %v8285_v62 }
 0x201   :  { %7592 = vmatpush3.bf16.msra.mxu1 %v8286_v1  ;;  %7599 = vmatprep.subr.bf16.mxu0 %v8287_v14  ;;  %v8328_v14 = vld [vmem:[#allocation5 + $0xfe8] sm:$0xff]  }
 0x202   :  { %7621 = vmatprep.subr.bf16.mxu1 %v8288_v16  ;;  %v8330_v16 = vld [vmem:[#allocation5 + $0xfa8] sm:$0xff]  }
 0x203   :  { %v7307_v57 = vpop.f32.mrf.mxu0  ;;  %5916 = vmatmul.mubr.bf16.vlgmr.msra.gmra.mxu0 %v208_v12  ;;  %v8326_v12 = vld [vmem:[#allocation5 + $0xfb0] sm:$0xff]  }
 0x204   :  { %v7329_v59 = vpop.f32.mrf.mxu1  ;;  %5956 = vmatmul.mubr.bf16.vlgmr.msra.gmra.mxu1 %v210_v13  ;;  %7600 = vmatpush3.bf16.msra.mxu0 %v8289_v19  ;;  %v8327_v13 = vld [vmem:[#allocation5 + $0xf68] sm:$0xff]   ;;  %v8333_v19 = vld [vmem:[#allocation5 + $0xf20] sm:$0xff]  }
 0x205   :  { %v7308_v61 = vpop.f32.mrf.mxu0  ;;  %7622 = vmatpush3.bf16.msra.mxu1 %v8290_v20  ;;  %7601 = vmatprep.subr.bf16.mxu0 %v8291_v21  ;;  %v8334_v20 = vld [vmem:[#allocation5 + $0xfa0] sm:$0xff]   ;;  %v8335_v21 = vld [vmem:[#allocation5 + $0xf58] sm:$0xff]  }
 0x206   :  { %v7309_v63 = vadd.f32 %v7308_v61, %v7307_v57  ;;  %v7330_v0 = vpop.f32.mrf.mxu1  ;;  %7623 = vmatprep.subr.bf16.mxu1 %v8292_v22  ;;  %v140_v57 = vld [vmem:[#allocation2 + $0x1c0] sm:$0xff]  ;;  %v215_v61 = vpack.c.bf16 %v143_v56, %v143_v56  ;;  %5995 = vmatprep.mubr.bf16.mxu0 %v213_v60  ;;  %v8336_v22 = vld [vmem:[#allocation5 + $0xfd8] sm:$0xff]  }
 0x207   :  { %v7331_v3 = vadd.f32 %v7330_v0, %v7329_v59  ;;  %v7310_v4 = vpop.f32.mrf.mxu0  ;;  %v212_v62 = vpack.c.bf16 %v140_v57, %v140_v57  ;;  %v8352_v56 = vld [vmem:[#allocation5 + $0x10f8] sm:$0xff]  }
 0x208   :  { %v5438_v9 = vadd.f32 %v7309_v63, %v8622_v30  ;;  %v7332_v10 = vpop.f32.mrf.mxu1  ;;  %7602 = vmatpush3.bf16.msra.mxu0 %v8293_v23  ;;  %v8300_v30 = vld [vmem:[#allocation5 + $0xee0] sm:$0xff]   ;;  %v142_v63 = vld [vmem:[#allocation2 + $0x1d0] sm:$0xff]  ;;  %6035 = vmatprep.mubr.bf16.mxu1 %v215_v61  ;;  %v8337_v23 = vld [vmem:[#allocation5 + $0xf18] sm:$0xff]  }
 0x209   :  { %v7311_v15 = vpop.f32.mrf.mxu0  ;;  %7624 = vmatpush3.bf16.msra.mxu1 %v8294_v24  ;;  %7603 = vmatprep.subr.bf16.mxu0 %v8295_v25  ;;  %v214_v1 = vpack.c.bf16 %v142_v63, %v142_v63  ;;  %v8324_v10 = vld [vmem:[#allocation5 + $0xff0] sm:$0xff]   ;;  %v8338_v24 = vld [vmem:[#allocation5 + $0xf98] sm:$0xff]  }
 0x20a   :  { %v8625_v17 = vadd.f32 %v7331_v3, %v5438_v9  ;;  %v7333_v18 = vpop.f32.mrf.mxu1  ;;  %7625 = vmatprep.subr.bf16.mxu1 %v8296_v26  ;;  %v8323_v9 = vld [vmem:[#allocation5 + $0xf70] sm:$0xff]   ;;  %v8329_v15 = vld [vmem:[#allocation5 + $0xf28] sm:$0xff]   ;;  %v8354_v60 = vld [vmem:[#allocation5 + $0x10b8] sm:$0xff]  }
 0x20b   :  { %v8332_v18 = vld [vmem:[#allocation5 + $0xfe0] sm:$0xff]   ;;  %v8339_v25 = vld [vmem:[#allocation5 + $0xf50] sm:$0xff]  }
 0x20c   :  { %7604 = vmatpush3.bf16.msra.mxu0 %v8297_v27  ;;  %v8340_v26 = vld [vmem:[#allocation5 + $0xfd0] sm:$0xff]  }
 0x20d   :  { %7626 = vmatpush3.bf16.msra.mxu1 %v8298_v28  ;;  %7605 = vmatprep.subr.bf16.mxu0 %v8299_v29  ;;  %v8341_v27 = vld [vmem:[#allocation5 + $0xf10] sm:$0xff]   ;;  %v8343_v29 = vld [vmem:[#allocation5 + $0xf48] sm:$0xff]  }
 0x20e   :  { %7627 = vmatprep.subr.bf16.mxu1 %v8300_v30  ;;  %v8342_v28 = vld [vmem:[#allocation5 + $0xf90] sm:$0xff]   ;;  %v8344_v30 = vld [vmem:[#allocation5 + $0xfc8] sm:$0xff]  }
 0x20f   :  { %v8355_v61 = vld [vmem:[#allocation5 + $0x1070] sm:$0xff]  }
 0x210   :  { %7606 = vmatpush3.bf16.msra.mxu0 %v8301_v31  ;;  %v8345_v31 = vld [vmem:[#allocation5 + $0xf08] sm:$0xff]   ;;  %v8357_v63 = vld [vmem:[#allocation5 + $0x1030] sm:$0xff]  }
 0x211   :  { %7628 = vmatpush3.bf16.msra.mxu1 %v8302_v32  ;;  %7607 = vmatprep.subr.bf16.mxu0 %v8303_v33  ;;  %v8346_v32 = vld [vmem:[#allocation5 + $0xf88] sm:$0xff]  }
 0x212   :  { %7629 = vmatprep.subr.bf16.mxu1 %v8304_v34  ;;  %v8347_v34 = vld [vmem:[#allocation5 + $0xf40] sm:$0xff]  }
 0x214   :  { %7608 = vmatpush3.bf16.msra.mxu0 %v8305_v35 }
 0x215   :  { %7630 = vmatpush3.bf16.msra.mxu1 %v8306_v36  ;;  %7609 = vmatprep.subr.bf16.mxu0 %v8307_v37  ;;  %v8348_v36 = vld [vmem:[#allocation5 + $0xfc0] sm:$0xff]  }
 0x216   :  { %7631 = vmatprep.subr.bf16.mxu1 %v8308_v38  ;;  %v8349_v38 = vld [vmem:[#allocation5 + $0xf00] sm:$0xff]  }
 0x218   :  { %7610 = vmatpush3.bf16.msra.mxu0 %v8309_v39 }
 0x219   :  { %7632 = vmatpush3.bf16.msra.mxu1 %v8310_v40  ;;  %7611 = vmatprep.subr.bf16.mxu0 %v8311_v41  ;;  %v8350_v41 = vld [vmem:[#allocation5 + $0xf80] sm:$0xff]  }
 0x21a   :  { %7633 = vmatprep.subr.bf16.mxu1 %v8312_v42  ;;  %v145_v42 = vld [vmem:[#allocation2 + $0x1e8] sm:$0xff] }
 0x21c   :  { %7612 = vmatpush3.bf16.msra.mxu0 %v8313_v43  ;;  %v147_v43 = vld [vmem:[#allocation2 + $0x1f8] sm:$0xff] }
 0x21d   :  { %7634 = vmatpush3.bf16.msra.mxu1 %v8314_v44  ;;  %7613 = vmatprep.subr.bf16.mxu0 %v8315_v45 }
 0x21e   :  { %7635 = vmatprep.subr.bf16.mxu1 %v8316_v48  ;;  %v144_v48 = vld [vmem:[#allocation2 + $0x1e0] sm:$0xff] }
 0x220   :  { %7614 = vmatpush3.bf16.msra.mxu0 %v8317_v49  ;;  %v146_v49 = vld [vmem:[#allocation2 + $0x1f0] sm:$0xff] }
 0x221   :  { %7636 = vmatpush3.bf16.msra.mxu1 %v8318_v52  ;;  %7643 = vmatprep.subr.bf16.mxu0 %v8319_v2  ;;  %v216_v52 = vpack.c.bf16 %v144_v48, %v144_v48  ;;  %v8360_v2 = vld [vmem:[#allocation5 + $0x10e8] sm:$0xff]   ;;  %v8386_v48 = vld [vmem:[#allocation5 + $0x11b8] sm:$0xff]  }
 0x222   :  { %7665 = vmatprep.subr.bf16.mxu1 %v8320_v5  ;;  %v8363_v5 = vld [vmem:[#allocation5 + $0x1060] sm:$0xff]  }
 0x223   :  { %v7351_v46 = vpop.f32.mrf.mxu0  ;;  %5996 = vmatmul.mubr.bf16.vlgmr.msra.gmra.mxu0 %v212_v62  ;;  %v8356_v62 = vld [vmem:[#allocation5 + $0x10f0] sm:$0xff]  }
 0x224   :  { %v7373_v47 = vpop.f32.mrf.mxu1  ;;  %6036 = vmatmul.mubr.bf16.vlgmr.msra.gmra.mxu1 %v214_v1  ;;  %7644 = vmatpush3.bf16.msra.mxu0 %v8321_v7  ;;  %v8359_v1 = vld [vmem:[#allocation5 + $0x1068] sm:$0xff]   ;;  %v8365_v7 = vld [vmem:[#allocation5 + $0x1020] sm:$0xff]  }
 0x225   :  { %v7352_v50 = vpop.f32.mrf.mxu0  ;;  %7666 = vmatpush3.bf16.msra.mxu1 %v8322_v8  ;;  %7645 = vmatprep.subr.bf16.mxu0 %v8323_v9  ;;  %v8366_v8 = vld [vmem:[#allocation5 + $0x10a0] sm:$0xff]   ;;  %v8367_v9 = vld [vmem:[#allocation5 + $0x1058] sm:$0xff]  }
 0x226   :  { %v7374_v51 = vpop.f32.mrf.mxu1  ;;  %v7353_v53 = vadd.f32 %v7352_v50, %v7351_v46  ;;  %7667 = vmatprep.subr.bf16.mxu1 %v8324_v10  ;;  %v217_v46 = vpack.c.bf16 %v145_v42, %v145_v42  ;;  %v8368_v10 = vld [vmem:[#allocation5 + $0x10d8] sm:$0xff]  }
 0x227   :  { %v7375_v54 = vadd.f32 %v7374_v51, %v7373_v47  ;;  %v7354_v58 = vpop.f32.mrf.mxu0  ;;  %v219_v47 = vpack.c.bf16 %v147_v43, %v147_v43  ;;  %v8383_v42 = vld [vmem:[#allocation5 + $0x1178] sm:$0xff]  }
 0x228   :  { %v7376_v59 = vpop.f32.mrf.mxu1  ;;  %v5518_v0 = vadd.f32 %v7353_v53, %v8625_v17  ;;  %7646 = vmatpush3.bf16.msra.mxu0 %v8325_v11  ;;  %v8331_v17 = vld [vmem:[#allocation5 + $0xf60] sm:$0xff]   ;;  %v218_v53 = vpack.c.bf16 %v146_v49, %v146_v49  ;;  %6075 = vmatprep.mubr.bf16.mxu0 %v217_v46  ;;  %v8369_v11 = vld [vmem:[#allocation5 + $0x1018] sm:$0xff]   ;;  %v8387_v49 = vld [vmem:[#allocation5 + $0x1170] sm:$0xff]  }
 0x229   :  { %v7355_v3 = vpop.f32.mrf.mxu0  ;;  %7668 = vmatpush3.bf16.msra.mxu1 %v8326_v12  ;;  %7647 = vmatprep.subr.bf16.mxu0 %v8327_v13  ;;  %v8353_v59 = vld [vmem:[#allocation5 + $0x1038] sm:$0xff]   ;;  %v8371_v13 = vld [vmem:[#allocation5 + $0x1050] sm:$0xff]  }
 0x22a   :  { %v7377_v4 = vpop.f32.mrf.mxu1  ;;  %v8628_v6 = vadd.f32 %v7375_v54, %v5518_v0  ;;  %7669 = vmatprep.subr.bf16.mxu1 %v8328_v14  ;;  %v8351_v54 = vld [vmem:[#allocation5 + $0x1078] sm:$0xff]   ;;  %6115 = vmatprep.mubr.bf16.mxu1 %v219_v47  ;;  %v8358_v0 = vld [vmem:[#allocation5 + $0x10b0] sm:$0xff]   ;;  %v8361_v3 = vld [vmem:[#allocation5 + $0x1028] sm:$0xff]  }
 0x22b   :  { %v8362_v4 = vld [vmem:[#allocation5 + $0x10a8] sm:$0xff]   ;;  %v8370_v12 = vld [vmem:[#allocation5 + $0x1098] sm:$0xff]   ;;  %v8372_v14 = vld [vmem:[#allocation5 + $0x10d0] sm:$0xff]  }
 0x22c   :  { %7648 = vmatpush3.bf16.msra.mxu0 %v8329_v15  ;;  %v8373_v15 = vld [vmem:[#allocation5 + $0x1010] sm:$0xff]   ;;  %v8385_v47 = vld [vmem:[#allocation5 + $0x1138] sm:$0xff]  }
 0x22d   :  { %7670 = vmatpush3.bf16.msra.mxu1 %v8330_v16  ;;  %7649 = vmatprep.subr.bf16.mxu0 %v8331_v17  ;;  %v8374_v16 = vld [vmem:[#allocation5 + $0x1090] sm:$0xff]   ;;  %v8375_v17 = vld [vmem:[#allocation5 + $0x1048] sm:$0xff]  }
 0x22e   :  { %7671 = vmatprep.subr.bf16.mxu1 %v8332_v18  ;;  %v8376_v18 = vld [vmem:[#allocation5 + $0x10c8] sm:$0xff]  }
 0x230   :  { %7650 = vmatpush3.bf16.msra.mxu0 %v8333_v19  ;;  %v8377_v19 = vld [vmem:[#allocation5 + $0x1008] sm:$0xff]  }
 0x231   :  { %7672 = vmatpush3.bf16.msra.mxu1 %v8334_v20  ;;  %7651 = vmatprep.subr.bf16.mxu0 %v8335_v21  ;;  %v8378_v20 = vld [vmem:[#allocation5 + $0x1088] sm:$0xff]  }
 0x232   :  { %7673 = vmatprep.subr.bf16.mxu1 %v8336_v22  ;;  %v8379_v22 = vld [vmem:[#allocation5 + $0x1040] sm:$0xff]  }
 0x234   :  { %7652 = vmatpush3.bf16.msra.mxu0 %v8337_v23 }
 0x235   :  { %7674 = vmatpush3.bf16.msra.mxu1 %v8338_v24  ;;  %7653 = vmatprep.subr.bf16.mxu0 %v8339_v25  ;;  %v8380_v24 = vld [vmem:[#allocation5 + $0x10c0] sm:$0xff]  }
 0x236   :  { %7675 = vmatprep.subr.bf16.mxu1 %v8340_v26  ;;  %v8381_v26 = vld [vmem:[#allocation5 + $0x1000] sm:$0xff]  }
 0x238   :  { %7654 = vmatpush3.bf16.msra.mxu0 %v8341_v27 }
 0x239   :  { %7676 = vmatpush3.bf16.msra.mxu1 %v8342_v28  ;;  %7655 = vmatprep.subr.bf16.mxu0 %v8343_v29  ;;  %v8382_v29 = vld [vmem:[#allocation5 + $0x1080] sm:$0xff]  }
 0x23a   :  { %7677 = vmatprep.subr.bf16.mxu1 %v8344_v30  ;;  %v149_v30 = vld [vmem:[#allocation2 + $0x208] sm:$0xff] }
 0x23c   :  { %7656 = vmatpush3.bf16.msra.mxu0 %v8345_v31 }
 0x23d   :  { %7678 = vmatpush3.bf16.msra.mxu1 %v8346_v32  ;;  %7657 = vmatprep.subr.bf16.mxu0 %v8347_v34  ;;  %v151_v34 = vld [vmem:[#allocation2 + $0x218] sm:$0xff] }
 0x23e   :  { %7679 = vmatprep.subr.bf16.mxu1 %v8348_v36  ;;  %v150_v36 = vld [vmem:[#allocation2 + $0x210] sm:$0xff] }
 0x240   :  { %7658 = vmatpush3.bf16.msra.mxu0 %v8349_v38 }
 0x241   :  { %7680 = vmatpush3.bf16.msra.mxu1 %v8350_v41  ;;  %7687 = vmatprep.subr.bf16.mxu0 %v8351_v54  ;;  %v222_v41 = vpack.c.bf16 %v150_v36, %v150_v36  ;;  %v8392_v54 = vld [vmem:[#allocation5 + $0x11e8] sm:$0xff]  }
 0x242   :  { %7709 = vmatprep.subr.bf16.mxu1 %v8352_v56  ;;  %v8394_v56 = vld [vmem:[#allocation5 + $0x11a8] sm:$0xff]  }
 0x243   :  { %v7395_v33 = vpop.f32.mrf.mxu0  ;;  %6076 = vmatmul.mubr.bf16.vlgmr.msra.gmra.mxu0 %v216_v52  ;;  %v8390_v52 = vld [vmem:[#allocation5 + $0x11b0] sm:$0xff]  }
 0x244   :  { %v7417_v35 = vpop.f32.mrf.mxu1  ;;  %6116 = vmatmul.mubr.bf16.vlgmr.msra.gmra.mxu1 %v218_v53  ;;  %7688 = vmatpush3.bf16.msra.mxu0 %v8353_v59  ;;  %v8391_v53 = vld [vmem:[#allocation5 + $0x1168] sm:$0xff]   ;;  %v8397_v59 = vld [vmem:[#allocation5 + $0x1120] sm:$0xff]  }
 0x245   :  { %v7396_v37 = vpop.f32.mrf.mxu0  ;;  %7710 = vmatpush3.bf16.msra.mxu1 %v8354_v60  ;;  %7689 = vmatprep.subr.bf16.mxu0 %v8355_v61  ;;  %v8398_v60 = vld [vmem:[#allocation5 + $0x11a0] sm:$0xff]   ;;  %v8399_v61 = vld [vmem:[#allocation5 + $0x1158] sm:$0xff]  }
 0x246   :  { %v7397_v39 = vadd.f32 %v7396_v37, %v7395_v33  ;;  %v7418_v40 = vpop.f32.mrf.mxu1  ;;  %7711 = vmatprep.subr.bf16.mxu1 %v8356_v62  ;;  %v221_v33 = vpack.c.bf16 %v149_v30, %v149_v30  ;;  %v8400_v62 = vld [vmem:[#allocation5 + $0x11d8] sm:$0xff]  }
 0x247   :  { %v7419_v44 = vadd.f32 %v7418_v40, %v7417_v35  ;;  %v7398_v45 = vpop.f32.mrf.mxu0  ;;  %v148_v35 = vld [vmem:[#allocation2 + $0x200] sm:$0xff] }
 0x248   :  { %v5598_v50 = vadd.f32 %v7397_v39, %v8628_v6  ;;  %v7420_v51 = vpop.f32.mrf.mxu1  ;;  %7690 = vmatpush3.bf16.msra.mxu0 %v8357_v63  ;;  %v8364_v6 = vld [vmem:[#allocation5 + $0x10e0] sm:$0xff]   ;;  %v223_v39 = vpack.c.bf16 %v151_v34, %v151_v34  ;;  %v220_v40 = vpack.c.bf16 %v148_v35, %v148_v35  ;;  %6155 = vmatprep.mubr.bf16.mxu0 %v221_v33  ;;  %v8401_v63 = vld [vmem:[#allocation5 + $0x1118] sm:$0xff]  }
 0x249   :  { %v7399_v55 = vpop.f32.mrf.mxu0  ;;  %7712 = vmatpush3.bf16.msra.mxu1 %v8358_v0  ;;  %7691 = vmatprep.subr.bf16.mxu0 %v8359_v1  ;;  %v8389_v51 = vld [vmem:[#allocation5 + $0x1130] sm:$0xff]   ;;  %v8402_v0 = vld [vmem:[#allocation5 + $0x1198] sm:$0xff]  }
 0x24a   :  { %v8631_v57 = vadd.f32 %v7419_v44, %v5598_v50  ;;  %v7421_v58 = vpop.f32.mrf.mxu1  ;;  %7713 = vmatprep.subr.bf16.mxu1 %v8360_v2  ;;  %v8384_v44 = vld [vmem:[#allocation5 + $0x11f8] sm:$0xff]   ;;  %6195 = vmatprep.mubr.bf16.mxu1 %v223_v39  ;;  %v8388_v50 = vld [vmem:[#allocation5 + $0x11f0] sm:$0xff]   ;;  %v8393_v55 = vld [vmem:[#allocation5 + $0x1128] sm:$0xff]  }
 0x24b   :  { %v8396_v58 = vld [vmem:[#allocation5 + $0x11e0] sm:$0xff]   ;;  %v8403_v1 = vld [vmem:[#allocation5 + $0x1150] sm:$0xff]  }
 0x24c   :  { %7692 = vmatpush3.bf16.msra.mxu0 %v8361_v3  ;;  %v8404_v2 = vld [vmem:[#allocation5 + $0x11d0] sm:$0xff]  }
 0x24d   :  { %7714 = vmatpush3.bf16.msra.mxu1 %v8362_v4  ;;  %7693 = vmatprep.subr.bf16.mxu0 %v8363_v5  ;;  %v8405_v3 = vld [vmem:[#allocation5 + $0x1110] sm:$0xff]   ;;  %v8407_v5 = vld [vmem:[#allocation5 + $0x1148] sm:$0xff]  }
 0x24e   :  { %7715 = vmatprep.subr.bf16.mxu1 %v8364_v6  ;;  %v8406_v4 = vld [vmem:[#allocation5 + $0x1190] sm:$0xff]   ;;  %v8408_v6 = vld [vmem:[#allocation5 + $0x11c8] sm:$0xff]  }
 0x250   :  { %7694 = vmatpush3.bf16.msra.mxu0 %v8365_v7  ;;  %v8409_v7 = vld [vmem:[#allocation5 + $0x1108] sm:$0xff]  }
 0x251   :  { %7716 = vmatpush3.bf16.msra.mxu1 %v8366_v8  ;;  %7695 = vmatprep.subr.bf16.mxu0 %v8367_v9  ;;  %v8410_v8 = vld [vmem:[#allocation5 + $0x1188] sm:$0xff]   ;;  %v8411_v9 = vld [vmem:[#allocation5 + $0x1140] sm:$0xff]  }
 0x252   :  { %7717 = vmatprep.subr.bf16.mxu1 %v8368_v10 }
 0x254   :  { %7696 = vmatpush3.bf16.msra.mxu0 %v8369_v11 }
 0x255   :  { %7718 = vmatpush3.bf16.msra.mxu1 %v8370_v12  ;;  %7697 = vmatprep.subr.bf16.mxu0 %v8371_v13  ;;  %v8412_v12 = vld [vmem:[#allocation5 + $0x11c0] sm:$0xff]  }
 0x256   :  { %7719 = vmatprep.subr.bf16.mxu1 %v8372_v14  ;;  %v8413_v13 = vld [vmem:[#allocation5 + $0x1100] sm:$0xff]  }
 0x258   :  { %7698 = vmatpush3.bf16.msra.mxu0 %v8373_v15 }
 0x259   :  { %7720 = vmatpush3.bf16.msra.mxu1 %v8374_v16  ;;  %7699 = vmatprep.subr.bf16.mxu0 %v8375_v17  ;;  %v8414_v16 = vld [vmem:[#allocation5 + $0x1180] sm:$0xff]  }
 0x25a   :  { %7721 = vmatprep.subr.bf16.mxu1 %v8376_v18 }
 0x25c   :  { %7700 = vmatpush3.bf16.msra.mxu0 %v8377_v19  ;;  %v153_v19 = vld [vmem:[#allocation2 + $0x228] sm:$0xff] }
 0x25d   :  { %7722 = vmatpush3.bf16.msra.mxu1 %v8378_v20  ;;  %7701 = vmatprep.subr.bf16.mxu0 %v8379_v22  ;;  %v155_v20 = vld [vmem:[#allocation2 + $0x238] sm:$0xff] }
 0x25e   :  { %7723 = vmatprep.subr.bf16.mxu1 %v8380_v24  ;;  %v225_v24 = vpack.c.bf16 %v153_v19, %v153_v19 }
 0x260   :  { %7702 = vmatpush3.bf16.msra.mxu0 %v8381_v26 }
 0x261   :  { %7724 = vmatpush3.bf16.msra.mxu1 %v8382_v29  ;;  %7731 = vmatprep.subr.bf16.mxu0 %v8383_v42 }
 0x262   :  { %7753 = vmatprep.subr.bf16.mxu1 %v8384_v44 }
 0x263   :  { %v7439_v21 = vpop.f32.mrf.mxu0  ;;  %6156 = vmatmul.mubr.bf16.vlgmr.msra.gmra.mxu0 %v220_v40 }
 0x264   :  { %v7461_v23 = vpop.f32.mrf.mxu1  ;;  %6196 = vmatmul.mubr.bf16.vlgmr.msra.gmra.mxu1 %v222_v41  ;;  %7732 = vmatpush3.bf16.msra.mxu0 %v8385_v47  ;;  %v6298_v47 = vld [vmem:[#allocation8 + $0x70] sm:$0xff] }
 0x265   :  { %v7440_v25 = vpop.f32.mrf.mxu0  ;;  %7754 = vmatpush3.bf16.msra.mxu1 %v8386_v48  ;;  %7733 = vmatprep.subr.bf16.mxu0 %v8387_v49  ;;  %v6297_v48 = vld [vmem:[#allocation8 + $0x68] sm:$0xff]  ;;  %v6296_v49 = vld [vmem:[#allocation8 + $0x60] sm:$0xff] }
 0x266   :  { %v7441_v27 = vadd.f32 %v7440_v25, %v7439_v21  ;;  %v7462_v28 = vpop.f32.mrf.mxu1  ;;  %7755 = vmatprep.subr.bf16.mxu1 %v8388_v50  ;;  %v152_v21 = vld [vmem:[#allocation2 + $0x220] sm:$0xff]  ;;  %v227_v25 = vpack.c.bf16 %v155_v20, %v155_v20  ;;  %6235 = vmatprep.mubr.bf16.mxu0 %v225_v24 }
 0x267   :  { %v7463_v31 = vadd.f32 %v7462_v28, %v7461_v23  ;;  %v7442_v32 = vpop.f32.mrf.mxu0  ;;  %v224_v26 = vpack.c.bf16 %v152_v21, %v152_v21  ;;  %v6295_v50 = vld [vmem:[#allocation8 + $0x58] sm:$0xff] }
 0x268   :  { %v5678_v37 = vadd.f32 %v7441_v27, %v8631_v57  ;;  %v7464_v38 = vpop.f32.mrf.mxu1  ;;  %7734 = vmatpush3.bf16.msra.mxu0 %v8389_v51  ;;  %v8395_v57 = vld [vmem:[#allocation5 + $0x1160] sm:$0xff]   ;;  %v154_v27 = vld [vmem:[#allocation2 + $0x230] sm:$0xff]  ;;  %6275 = vmatprep.mubr.bf16.mxu1 %v227_v25 }
 0x269   :  { %v7443_v43 = vpop.f32.mrf.mxu0  ;;  %7756 = vmatpush3.bf16.msra.mxu1 %v8390_v52  ;;  %7735 = vmatprep.subr.bf16.mxu0 %v8391_v53  ;;  %v226_v29 = vpack.c.bf16 %v154_v27, %v154_v27  ;;  %v6294_v51 = vld [vmem:[#allocation8 + $0x50] sm:$0xff]  ;;  %v6293_v52 = vld [vmem:[#allocation8 + $0x48] sm:$0xff]  ;;  %v6292_v53 = vld [vmem:[#allocation8 + $0x40] sm:$0xff] }
 0x26a   :  { %v8634_v45 = vadd.f32 %v7463_v31, %v5678_v37  ;;  %v7465_v46 = vpop.f32.mrf.mxu1  ;;  %7757 = vmatprep.subr.bf16.mxu1 %v8392_v54  ;;  %v6291_v54 = vld [vmem:[#allocation8 + $0x38] sm:$0xff] }
 0x26b   :  { %v8556_v46 = vmov 0.0  }
 0x26c   :  { %7736 = vmatpush3.bf16.msra.mxu0 %v8393_v55  ;;  %v6290_v55 = vld [vmem:[#allocation8 + $0x30] sm:$0xff] }
 0x26d   :  { %7758 = vmatpush3.bf16.msra.mxu1 %v8394_v56  ;;  %7737 = vmatprep.subr.bf16.mxu0 %v8395_v57 }
 0x26e   :  { %7759 = vmatprep.subr.bf16.mxu1 %v8396_v58 }
 0x270   :  { %7738 = vmatpush3.bf16.msra.mxu0 %v8397_v59 }
 0x271   :  { %7760 = vmatpush3.bf16.msra.mxu1 %v8398_v60  ;;  %7739 = vmatprep.subr.bf16.mxu0 %v8399_v61 }
 0x272   :  { %7761 = vmatprep.subr.bf16.mxu1 %v8400_v62 }
 0x274   :  { %7740 = vmatpush3.bf16.msra.mxu0 %v8401_v63 }
 0x275   :  { %7762 = vmatpush3.bf16.msra.mxu1 %v8402_v0  ;;  %7741 = vmatprep.subr.bf16.mxu0 %v8403_v1  ;;  %v6289_v1 = vld [vmem:[#allocation8 + $0x28] sm:$0xff] }
 0x276   :  { %7763 = vmatprep.subr.bf16.mxu1 %v8404_v2 }
 0x278   :  { %7742 = vmatpush3.bf16.msra.mxu0 %v8405_v3 }
 0x279   :  { %7764 = vmatpush3.bf16.msra.mxu1 %v8406_v4  ;;  %7743 = vmatprep.subr.bf16.mxu0 %v8407_v5  ;;  %v6288_v5 = vld [vmem:[#allocation8 + $0x20] sm:$0xff] }
 0x27a   :  { %7765 = vmatprep.subr.bf16.mxu1 %v8408_v6  ;;  %v6287_v6 = vld [vmem:[#allocation8 + $0x18] sm:$0xff] }
 0x27c   :  { %7744 = vmatpush3.bf16.msra.mxu0 %v8409_v7  ;;  %v6286_v7 = vld [vmem:[#allocation8 + $0x10] sm:$0xff] }
 0x27d   :  { %7766 = vmatpush3.bf16.msra.mxu1 %v8410_v8  ;;  %7745 = vmatprep.subr.bf16.mxu0 %v8411_v9  ;;  %v6285_v8 = vld [vmem:[#allocation8 + $0x8] sm:$0xff]  ;;  %v6284_v9 = vld [vmem:[#allocation8] sm:$0xff] }
 0x27e   :  { %7767 = vmatprep.subr.bf16.mxu1 %v8412_v12 }
 0x280   :  { %7746 = vmatpush3.bf16.msra.mxu0 %v8413_v13 }
 0x281   :  { %7768 = vmatpush3.bf16.msra.mxu1 %v8414_v16  ;;  %7792 = vmatprep.subr.mxu0 %v8556_v46 }
 0x283   :  { %v7483_v10 = vpop.f32.mrf.mxu0  ;;  %6236 = vmatmul.mubr.bf16.vlgmr.msra.gmra.mxu0 %v224_v26 }
 0x284   :  { %v7505_v11 = vpop.f32.mrf.mxu1  ;;  %6276 = vmatmul.mubr.bf16.vlgmr.msra.gmra.mxu1 %v226_v29  ;;  %7824 = vmatprep.mubr.msk.f32.mxu0 %vm8557_vm0, %v8556_v46 }
 0x285   :  { %v7484_v14 = vpop.f32.mrf.mxu0 }
 0x286   :  { %v7506_v15 = vpop.f32.mrf.mxu1  ;;  %v7485_v17 = vadd.f32 %v7484_v14, %v7483_v10 }
 0x287   :  { %v7507_v18 = vadd.f32 %v7506_v15, %v7505_v11  ;;  %v7486_v22 = vpop.f32.mrf.mxu0 }
 0x288   :  { %v7508_v23 = vpop.f32.mrf.mxu1  ;;  %v5758_v28 = vadd.f32 %v7485_v17, %v8634_v45  ;;  %v6299_v45 = vld [vmem:[#allocation8 + $0x78] sm:$0xff] }
 0x289   :  { %v7487_v30 = vpop.f32.mrf.mxu0  ;;  %7793 = vmatpush3.msra.mxu0 %v6299_v45 }
 0x28a   :  { %v7509_v31 = vpop.f32.mrf.mxu1  ;;  %v5798_v32 = vadd.f32 %v7507_v18, %v5758_v28  ;;  %7794 = vmatprep.subr.mxu0 %v8556_v46 }
 0x28b   :  { %7795 = vmatpush3.msra.mxu0 %v6298_v47 }
 0x28c   :  { %7796 = vmatprep.subr.mxu0 %v8556_v46 }
 0x28d   :  { %7797 = vmatpush3.msra.mxu0 %v6297_v48 }
 0x28e   :  { %7798 = vmatprep.subr.mxu0 %v8556_v46 }
 0x28f   :  { %7799 = vmatpush3.msra.mxu0 %v6296_v49 }
 0x290   :  { %7800 = vmatprep.subr.mxu0 %v8556_v46 }
 0x291   :  { %7801 = vmatpush3.msra.mxu0 %v6295_v50 }
 0x292   :  { %7802 = vmatprep.subr.mxu0 %v8556_v46 }
 0x293   :  { %7803 = vmatpush3.msra.mxu0 %v6294_v51 }
 0x294   :  { %7804 = vmatprep.subr.mxu0 %v8556_v46 }
 0x295   :  { %7805 = vmatpush3.msra.mxu0 %v6293_v52 }
 0x296   :  { %7806 = vmatprep.subr.mxu0 %v8556_v46 }
 0x297   :  { %7807 = vmatpush3.msra.mxu0 %v6292_v53 }
 0x298   :  { %7808 = vmatprep.subr.mxu0 %v8556_v46 }
 0x299   :  { %7809 = vmatpush3.msra.mxu0 %v6291_v54 }
 0x29a   :  { %7810 = vmatprep.subr.mxu0 %v8556_v46 }
 0x29b   :  { %7811 = vmatpush3.msra.mxu0 %v6290_v55 }
 0x29c   :  { %7812 = vmatprep.subr.mxu0 %v8556_v46 }
 0x29d   :  { %7813 = vmatpush3.msra.mxu0 %v6289_v1 }
 0x29e   :  { %7814 = vmatprep.subr.mxu0 %v8556_v46 }
 0x29f   :  { %7815 = vmatpush3.msra.mxu0 %v6288_v5 }
 0x2a0   :  { %7816 = vmatprep.subr.mxu0 %v8556_v46 }
 0x2a1   :  { %7817 = vmatpush3.msra.mxu0 %v6287_v6 }
 0x2a2   :  { %7818 = vmatprep.subr.mxu0 %v8556_v46 }
 0x2a3   :  { %v7527_v33 = vpop.f32.mrf.mxu0  ;;  %7819 = vmatpush3.msra.mxu0 %v6286_v7 }
 0x2a4   :  { %v7549_v34 = vpop.f32.mrf.mxu1  ;;  %7820 = vmatprep.subr.mxu0 %v8556_v46 }
 0x2a5   :  { %v7528_v35 = vpop.f32.mrf.mxu0  ;;  %7821 = vmatpush3.msra.mxu0 %v6285_v8 }
 0x2a6   :  { %v7529_v36 = vadd.f32 %v7528_v35, %v7527_v33  ;;  %v7550_v37 = vpop.f32.mrf.mxu1  ;;  %7822 = vmatprep.subr.mxu0 %v8556_v46 }
 0x2a7   :  { %v7551_v38 = vadd.f32 %v7550_v37, %v7549_v34  ;;  %v7530_v39 = vpop.f32.mrf.mxu0  ;;  %7823 = vmatpush3.msra.mxu0 %v6284_v9 }
 0x2a8   :  { %v5838_v40 = vadd.f32 %v7529_v36, %v5798_v32  ;;  %v7552_v41 = vpop.f32.mrf.mxu1 }
 0x2a9   :  { %v7531_v42 = vpop.f32.mrf.mxu0 }
 0x2aa   :  { %v5878_v43 = vadd.f32 %v7551_v38, %v5838_v40  ;;  %v7553_v44 = vpop.f32.mrf.mxu1 }
 0x2c3   :  { %v7571_v56 = vpop.f32.mrf.mxu0 }
 0x2c4   :  { %v7593_v57 = vpop.f32.mrf.mxu1 }
 0x2c5   :  { %v7572_v58 = vpop.f32.mrf.mxu0 }
 0x2c6   :  { %v7573_v59 = vadd.f32 %v7572_v58, %v7571_v56  ;;  %v7594_v60 = vpop.f32.mrf.mxu1 }
 0x2c7   :  { %v7595_v61 = vadd.f32 %v7594_v60, %v7593_v57  ;;  %v7574_v62 = vpop.f32.mrf.mxu0 }
 0x2c8   :  { %v5918_v63 = vadd.f32 %v7573_v59, %v5878_v43  ;;  %v7596_v0 = vpop.f32.mrf.mxu1  ;;  %v6982_v59 = vld [vmem:[#allocation10] ss:$0 sm:$0xff] }
 0x2c9   :  { %v7575_v2 = vpop.f32.mrf.mxu0 }
 0x2ca   :  { %v5958_v3 = vadd.f32 %v7595_v61, %v5918_v63  ;;  %v7597_v4 = vpop.f32.mrf.mxu1 }
 0x2e3   :  { %v7615_v10 = vpop.f32.mrf.mxu0 }
 0x2e4   :  { %v7637_v11 = vpop.f32.mrf.mxu1 }
 0x2e5   :  { %v7616_v12 = vpop.f32.mrf.mxu0 }
 0x2e6   :  { %v7638_v13 = vpop.f32.mrf.mxu1  ;;  %v7617_v14 = vadd.f32 %v7616_v12, %v7615_v10 }
 0x2e7   :  { %v7639_v15 = vadd.f32 %v7638_v13, %v7637_v11  ;;  %v7618_v16 = vpop.f32.mrf.mxu0 }
 0x2e8   :  { %v7640_v17 = vpop.f32.mrf.mxu1  ;;  %v5998_v18 = vadd.f32 %v7617_v14, %v5958_v3 }
 0x2e9   :  { %v7619_v19 = vpop.f32.mrf.mxu0 }
 0x2ea   :  { %v7641_v20 = vpop.f32.mrf.mxu1  ;;  %v6038_v21 = vadd.f32 %v7639_v15, %v5998_v18 }
 0x303   :  { %v7659_v22 = vpop.f32.mrf.mxu0 }
 0x304   :  { %v7681_v23 = vpop.f32.mrf.mxu1 }
 0x305   :  { %v7660_v24 = vpop.f32.mrf.mxu0 }
 0x306   :  { %v7682_v25 = vpop.f32.mrf.mxu1  ;;  %v7661_v38 = vadd.f32 %v7660_v24, %v7659_v22 }
 0x307   :  { %v7662_v26 = vpop.f32.mrf.mxu0  ;;  %v7683_v40 = vadd.f32 %v7682_v25, %v7681_v23 }
 0x308   :  { %v7684_v27 = vpop.f32.mrf.mxu1  ;;  %v6078_v39 = vadd.f32 %v7661_v38, %v6038_v21 }
 0x309   :  { %v7663_v28 = vpop.f32.mrf.mxu0 }
 0x30a   :  { %v7685_v29 = vpop.f32.mrf.mxu1  ;;  %v6118_v42 = vadd.f32 %v7683_v40, %v6078_v39 }
 0x323   :  { %v7703_v30 = vpop.f32.mrf.mxu0 }
 0x324   :  { %v7725_v31 = vpop.f32.mrf.mxu1 }
 0x325   :  { %v7704_v32 = vpop.f32.mrf.mxu0 }
 0x326   :  { %v7726_v33 = vpop.f32.mrf.mxu1  ;;  %v7705_v41 = vadd.f32 %v7704_v32, %v7703_v30 }
 0x327   :  { %v7706_v34 = vpop.f32.mrf.mxu0  ;;  %v7727_v44 = vadd.f32 %v7726_v33, %v7725_v31 }
 0x328   :  { %v7728_v35 = vpop.f32.mrf.mxu1  ;;  %v6158_v43 = vadd.f32 %v7705_v41, %v6118_v42 }
 0x329   :  { %v7707_v36 = vpop.f32.mrf.mxu0 }
 0x32a   :  { %v7729_v37 = vpop.f32.mrf.mxu1  ;;  %v6198_v49 = vadd.f32 %v7727_v44, %v6158_v43 }
 0x343   :  { %v7747_v45 = vpop.f32.mrf.mxu0 }
 0x344   :  { %v7769_v46 = vpop.f32.mrf.mxu1 }
 0x345   :  { %v7748_v47 = vpop.f32.mrf.mxu0 }
 0x346   :  { %v7770_v48 = vpop.f32.mrf.mxu1  ;;  %v7749_v50 = vadd.f32 %v7748_v47, %v7747_v45 }
 0x347   :  { %v7750_v51 = vpop.f32.mrf.mxu0  ;;  %v7771_v54 = vadd.f32 %v7770_v48, %v7769_v46 }
 0x348   :  { %v7772_v52 = vpop.f32.mrf.mxu1  ;;  %v6238_v53 = vadd.f32 %v7749_v50, %v6198_v49 }
 0x349   :  { %v7751_v55 = vpop.f32.mrf.mxu0 }
 0x34a   :  { %v7773_v56 = vpop.f32.mrf.mxu1  ;;  %v6278_v57 = vadd.f32 %v7771_v54, %v6238_v53 }
 0x34c   :  { %v6283_v58 = vmax.f32 %v6278_v57, 0.0 }
 0x34e   :  { %7825 = vmatmul.mubr.f32.vlgmr.msra.gmra.mxu0 %v6283_v58 }
 0x40e   :  { %v6373_v60 = vpop.f32.mrf.mxu0 }
 0x40f   :  { %v6374_v61 = vadd.f32 %v6982_v59, %v6373_v60 }
 0x410   :  { %v7826_v62 = vpop.f32.mrf.mxu0 }
 0x411   :  { %6377 = vmax.xlane.f32.xlu0 %v6374_v61 }
 0x49a   :  { %v6378_v63 = vpop.xlane.xlu0 %6377 }
 0x49b   :  { %v6379_v0 = vsub.f32 %v6374_v61, %v6378_v63 }
 0x49d   :  { %v6380_v1 = vmul.f32 1.442695, %v6379_v0 }
 0x49f   :  { %8415 = vpow2.f32 %v6380_v1 }
 0x4ac   :  { %v8416_v2 = vpop.eup %8415 }
 0x4ad   :  { %6382 = vadd.xlane.f32.xlu0 %v8416_v2 }
 0x536   :  { %v6383_v3 = vpop.xlane.xlu0 %6382 }
 0x537   :  { %8417 = vlog2.f32 %v6383_v3 }
 0x544   :  { %v8418_v4 = vpop.eup %8417 }
 0x545   :  { %v6385_v5 = vmul.f32 0.6931472, %v8418_v4 }
 0x547   :  { %v6386_v6 = vsub.f32 %v6379_v0, %v6385_v5 }
 0x549   :  { %6387 = vst [vmem:[#allocation11] sm:$0xff] %v6386_v6 }
 0x54a   :  { %8530 = shalt.err (!%p8527_p1)
}
 0x54b   :  { %6397 = dma.vmem_to_hbm [thread:$0]  %s6395_s4, 128, %s8645_s5, [#allocation4]  }
 0x54c   :  { %8545 = dma.done.wait [#allocation4], 128  }
 0x54d   :  { %8546 = vsyncadd [#allocation4], 4294967168 }
 0x54e   :  { %6401 = vsyncpa [#allocation3], 1 }
 0x54f   :  { %6402 = vsyncpa [#allocation6], 1 }
 0x550   :  { %6403 = vsyncpa [#allocation9], 1 }
 0x551   :  { %6404 = vsyncpa [#allocation4], 1 }

</bundles_post_ra>
